<compile_context>
chip_gen: v7x
topology: tpu7x:2x2x1
jax: 0.10.0
libtpu: 0.0.40
codegen_flags: <defaults>
</compile_context>

<pallas_src>
import functools

import jax
import jax.numpy as jnp
from jax.experimental import pallas as pl
from jax.experimental.pallas import tpu as pltpu


# ----------------------------------------------------------------------------
# Fused ViT-forward kernel (one grid program = one batch element x one block)
# ----------------------------------------------------------------------------
def _fused_vit_kernel(
    # inputs
    patches_ref, beh_ref, pos_ref,
    patch_w_ref, patch_b_ref, beh_w_ref, beh_b_ref,
    ln1_g_ref, ln1_b_ref, qkv_w_ref, qkv_b_ref, out_w_ref, out_b_ref,
    ln2_g_ref, ln2_b_ref, mlp1_w_ref, mlp1_b_ref, mlp2_w_ref, mlp2_b_ref,
    # outputs
    tokens_ref, probs_ref,
    # scratch
    tok_scratch,
    *, heads, head_dim, scale, eps,
):
    blk = pl.program_id(1)          # transformer-block index (sequential axis)
    inner = heads * head_dim

    # --- embedding prologue: only on the first block of each batch element ---
    @pl.when(blk == 0)
    def _embed():
        t = jnp.dot(patches_ref[0], patch_w_ref[...],
                    preferred_element_type=jnp.float32) + patch_b_ref[...]   # (N, D)
        be = jnp.dot(beh_ref[0], beh_w_ref[...],
                     preferred_element_type=jnp.float32) + beh_b_ref[...]    # (1, D)
        tok_scratch[...] = t + pos_ref[...] + be                             # (N, D)

    def _layernorm(x, g, b):
        mu = jnp.mean(x, axis=-1, keepdims=True)
        var = jnp.mean(jnp.square(x - mu), axis=-1, keepdims=True)
        return (x - mu) * jax.lax.rsqrt(var + eps) * g + b

    x = tok_scratch[...]                                                     # (N, D) f32

    # ---------------- attention sub-block (pre-LN) ----------------
    xn = _layernorm(x, ln1_g_ref[0], ln1_b_ref[0])
    qkv = jnp.dot(xn, qkv_w_ref[0],
                  preferred_element_type=jnp.float32) + qkv_b_ref[0]         # (N, 3*inner)

    q_all = qkv[:, 0 * inner:1 * inner] * scale   # pre-scale q (N*dh, not N*N)
    k_all = qkv[:, 1 * inner:2 * inner]
    v_all = qkv[:, 2 * inner:3 * inner]

    head_outs = []
    for h in range(heads):            # static unrolled loop over heads
        lo, hi = h * head_dim, (h + 1) * head_dim
        q = q_all[:, lo:hi]
        k = k_all[:, lo:hi]
        v = v_all[:, lo:hi]
        s = jnp.dot(q, k.T, preferred_element_type=jnp.float32)              # (N, N)
        m = jnp.max(s, axis=-1, keepdims=True)
        e = jnp.exp(s - m)
        # exact divide: recorded softmax rows must sum to 1 within 1e-5
        p = e / jnp.sum(e, axis=-1, keepdims=True)
        probs_ref[0, 0, h] = p.astype(probs_ref.dtype)                       # recorded map
        head_outs.append(jnp.dot(p, v, preferred_element_type=jnp.float32))  # (N, dh)

    attn = jnp.concatenate(head_outs, axis=-1)                               # (N, inner)
    x = x + jnp.dot(attn, out_w_ref[0],
                    preferred_element_type=jnp.float32) + out_b_ref[0]       # residual

    # ---------------- MLP sub-block (pre-LN, fused GELU) ----------------
    xn2 = _layernorm(x, ln2_g_ref[0], ln2_b_ref[0])
    h1 = jax.nn.gelu(jnp.dot(xn2, mlp1_w_ref[0],
                             preferred_element_type=jnp.float32) + mlp1_b_ref[0])
    h2 = jnp.dot(h1, mlp2_w_ref[0],
                 preferred_element_type=jnp.float32) + mlp2_b_ref[0]
    x = x + h2                                                               # residual

    tok_scratch[...] = x                         # carried to the next block
    tokens_ref[0] = x.astype(tokens_ref.dtype)   # resident output; final write wins


# ----------------------------------------------------------------------------
# Wrapper: patchify (pure layout), one fused pallas_call for the whole forward
# ----------------------------------------------------------------------------
def recorder_forward(images, behaviors, pupil_centers, params, *,
                     patch_size, heads, head_dim):
    """Replicates Recorder.forward: returns (outputs, attentions).

    outputs:    (B, num_patches, emb_dim)   -- core transformer output
    attentions: (B, num_blocks, heads, num_patches, num_patches)
    """
    B, C, H, W = images.shape
    p = patch_size
    nph, npw = H // p, W // p
    N = nph * npw
    patch_dim = C * p * p
    emb_dim = params["patch_w"].shape[1]
    num_blocks = params["qkv_w"].shape[0]
    inner = heads * head_dim
    mlp_dim = params["mlp1_w"].shape[-1]
    scale = head_dim ** -0.5

    # patchify (pure layout / data movement, done once in XLA)
    patches = images.reshape(B, C, nph, p, npw, p)
    patches = patches.transpose(0, 2, 4, 1, 3, 5).reshape(B, N, patch_dim)
    beh = jnp.concatenate([behaviors, pupil_centers], axis=-1)
    beh_dim = beh.shape[-1]
    beh = beh.reshape(B, 1, beh_dim)

    kernel = functools.partial(_fused_vit_kernel, heads=heads,
                               head_dim=head_dim, scale=scale, eps=1e-5)

    cmap2 = lambda bi, blk: (0, 0)        # constant (embedding weights)
    wmap = lambda bi, blk: (blk, 0, 0)    # per-block stacked weights
    bmap = lambda bi, blk: (bi, 0, 0)     # per-batch-element inputs/outputs

    outputs, attentions = pl.pallas_call(
        kernel,
        out_shape=(
            jax.ShapeDtypeStruct((B, N, emb_dim), images.dtype),
            jax.ShapeDtypeStruct((B, num_blocks, heads, N, N), jnp.float32),
        ),
        grid=(B, num_blocks),
        in_specs=[
            pl.BlockSpec((1, N, patch_dim), bmap),          # patches
            pl.BlockSpec((1, 1, beh_dim), bmap),            # behavior ++ pupil
            pl.BlockSpec((N, emb_dim), cmap2),              # pos_emb
            pl.BlockSpec((patch_dim, emb_dim), cmap2),      # patch_w
            pl.BlockSpec((1, emb_dim), cmap2),              # patch_b
            pl.BlockSpec((beh_dim, emb_dim), cmap2),        # beh_w
            pl.BlockSpec((1, emb_dim), cmap2),              # beh_b
            pl.BlockSpec((1, 1, emb_dim), wmap),            # ln1_g
            pl.BlockSpec((1, 1, emb_dim), wmap),            # ln1_b
            pl.BlockSpec((1, emb_dim, 3 * inner), wmap),    # qkv_w
            pl.BlockSpec((1, 1, 3 * inner), wmap),          # qkv_b
            pl.BlockSpec((1, inner, emb_dim), wmap),        # out_w
            pl.BlockSpec((1, 1, emb_dim), wmap),            # out_b
            pl.BlockSpec((1, 1, emb_dim), wmap),            # ln2_g
            pl.BlockSpec((1, 1, emb_dim), wmap),            # ln2_b
            pl.BlockSpec((1, emb_dim, mlp_dim), wmap),      # mlp1_w
            pl.BlockSpec((1, 1, mlp_dim), wmap),            # mlp1_b
            pl.BlockSpec((1, mlp_dim, emb_dim), wmap),      # mlp2_w
            pl.BlockSpec((1, 1, emb_dim), wmap),            # mlp2_b
        ],
        out_specs=(
            pl.BlockSpec((1, N, emb_dim), bmap),
            pl.BlockSpec((1, 1, heads, N, N), lambda bi, blk: (bi, blk, 0, 0, 0)),
        ),
        scratch_shapes=[pltpu.VMEM((N, emb_dim), jnp.float32)],
        compiler_params=pltpu.CompilerParams(
            dimension_semantics=("parallel", "arbitrary")),
    )(
        patches, beh, params["pos_emb"],
        params["patch_w"], params["patch_b"], params["beh_w"], params["beh_b"],
        params["ln1_g"], params["ln1_b"], params["qkv_w"], params["qkv_b"],
        params["out_w"], params["out_b"], params["ln2_g"], params["ln2_b"],
        params["mlp1_w"], params["mlp1_b"], params["mlp2_w"], params["mlp2_b"],
    )
    return outputs, attentions


# ----------------------------------------------------------------------------
# Parameter init (per-block weights stacked along a leading num_blocks axis)
# ----------------------------------------------------------------------------
def init_params(key, *, patch_dim, emb_dim, heads, head_dim, mlp_dim,
                num_blocks, num_patches, behavior_dim):
    def dense(k, fan_in, fan_out):
        w = jax.random.normal(k, (fan_in, fan_out), jnp.float32) / jnp.sqrt(float(fan_in))
        b = jnp.zeros((1, fan_out), jnp.float32)
        return w, b

    inner = heads * head_dim
    keys = jax.random.split(key, 3 + num_blocks)

    params = {}
    params["patch_w"], params["patch_b"] = dense(keys[0], patch_dim, emb_dim)
    params["beh_w"], params["beh_b"] = dense(keys[1], behavior_dim, emb_dim)
    params["pos_emb"] = 0.02 * jax.random.normal(
        keys[2], (num_patches, emb_dim), jnp.float32)

    qkv_ws, qkv_bs, out_ws, out_bs = [], [], [], []
    m1_ws, m1_bs, m2_ws, m2_bs = [], [], [], []
    for blk in range(num_blocks):
        k0, k1, k2, k3 = jax.random.split(keys[3 + blk], 4)
        w, b = dense(k0, emb_dim, 3 * inner); qkv_ws.append(w); qkv_bs.append(b)
        w, b = dense(k1, inner, emb_dim);     out_ws.append(w); out_bs.append(b)
        w, b = dense(k2, emb_dim, mlp_dim);   m1_ws.append(w);  m1_bs.append(b)
        w, b = dense(k3, mlp_dim, emb_dim);   m2_ws.append(w);  m2_bs.append(b)

    params["qkv_w"] = jnp.stack(qkv_ws);  params["qkv_b"] = jnp.stack(qkv_bs)
    params["out_w"] = jnp.stack(out_ws);  params["out_b"] = jnp.stack(out_bs)
    params["mlp1_w"] = jnp.stack(m1_ws);  params["mlp1_b"] = jnp.stack(m1_bs)
    params["mlp2_w"] = jnp.stack(m2_ws);  params["mlp2_b"] = jnp.stack(m2_bs)
    params["ln1_g"] = jnp.ones((num_blocks, 1, emb_dim), jnp.float32)
    params["ln1_b"] = jnp.zeros((num_blocks, 1, emb_dim), jnp.float32)
    params["ln2_g"] = jnp.ones((num_blocks, 1, emb_dim), jnp.float32)
    params["ln2_b"] = jnp.zeros((num_blocks, 1, emb_dim), jnp.float32)
    return params


# ----------------------------------------------------------------------------
# Main
# ----------------------------------------------------------------------------
if __name__ == "__main__":
    # Small shapes consistent with the V1T core inputs.
    B, C, H, W = 2, 1, 16, 16
    PATCH = 4
    N_PATCHES = (H // PATCH) * (W // PATCH)     # 16
    EMB_DIM = 32
    HEADS = 2
    HEAD_DIM = 16
    MLP_DIM = 64
    NUM_BLOCKS = 2
    BEH_DIM = 3 + 2  # behaviors (3) ++ pupil_centers (2)

    key = jax.random.PRNGKey(0)
    k_img, k_beh, k_pup, k_par = jax.random.split(key, 4)

    images = jax.random.normal(k_img, (B, C, H, W), jnp.float32)        # NCHW
    behaviors = jax.random.normal(k_beh, (B, 3), jnp.float32)
    pupil_centers = jax.random.normal(k_pup, (B, 2), jnp.float32)
    mouse_id = "A"  # unused by the synthetic core (no per-mouse readout here)
    # TODO(synk): Recorder hook / cache bookkeeping (register_forward_hook, eject,
    # clear) has no kernel equivalent; the softmax maps are emitted as a kernel
    # output instead.

    params = init_params(
        k_par,
        patch_dim=C * PATCH * PATCH,
        emb_dim=EMB_DIM,
        heads=HEADS,
        head_dim=HEAD_DIM,
        mlp_dim=MLP_DIM,
        num_blocks=NUM_BLOCKS,
        num_patches=N_PATCHES,
        behavior_dim=BEH_DIM,
    )

    fwd = jax.jit(functools.partial(
        recorder_forward, patch_size=PATCH, heads=HEADS, head_dim=HEAD_DIM))
    outputs, attentions = fwd(images, behaviors, pupil_centers, params)
    jax.block_until_ready((outputs, attentions))

    assert outputs.shape == (B, N_PATCHES, EMB_DIM), outputs.shape
    assert attentions.shape == (B, NUM_BLOCKS, HEADS, N_PATCHES, N_PATCHES), attentions.shape
    # each recorded softmax row must sum to 1
    row_sums = jnp.sum(attentions, axis=-1)
    assert bool(jnp.allclose(row_sums, 1.0, atol=1e-5)), "softmax rows must sum to 1"
    assert bool(jnp.all(jnp.isfinite(outputs))), "non-finite core outputs"

    print("KERNEL_OK")
</pallas_src>

<mosaic_0001>
module attributes {stable_mosaic.version = 11 : i64} {
  func.func @_fused_vit_kernel(%arg0: i32, %arg1: i32, %arg2: memref<1x16x16xf32, #tpu.memory_space<vmem>>, %arg3: memref<1x1x5xf32, #tpu.memory_space<vmem>>, %arg4: memref<16x32xf32, #tpu.memory_space<vmem>>, %arg5: memref<16x32xf32, #tpu.memory_space<vmem>>, %arg6: memref<1x32xf32, #tpu.memory_space<vmem>>, %arg7: memref<5x32xf32, #tpu.memory_space<vmem>>, %arg8: memref<1x32xf32, #tpu.memory_space<vmem>>, %arg9: memref<1x1x32xf32, #tpu.memory_space<vmem>>, %arg10: memref<1x1x32xf32, #tpu.memory_space<vmem>>, %arg11: memref<1x32x96xf32, #tpu.memory_space<vmem>>, %arg12: memref<1x1x96xf32, #tpu.memory_space<vmem>>, %arg13: memref<1x32x32xf32, #tpu.memory_space<vmem>>, %arg14: memref<1x1x32xf32, #tpu.memory_space<vmem>>, %arg15: memref<1x1x32xf32, #tpu.memory_space<vmem>>, %arg16: memref<1x1x32xf32, #tpu.memory_space<vmem>>, %arg17: memref<1x32x64xf32, #tpu.memory_space<vmem>>, %arg18: memref<1x1x64xf32, #tpu.memory_space<vmem>>, %arg19: memref<1x64x32xf32, #tpu.memory_space<vmem>>, %arg20: memref<1x1x32xf32, #tpu.memory_space<vmem>>, %arg21: memref<1x16x32xf32, #tpu.memory_space<vmem>>, %arg22: memref<1x1x2x16x16xf32, #tpu.memory_space<vmem>>, %arg23: memref<16x32xf32, #tpu.memory_space<vmem>>) attributes {dimension_semantics = [#tpu.dimension_semantics<parallel>, #tpu.dimension_semantics<arbitrary>], iteration_bounds = array<i64: 2, 2>, scalar_prefetch = 0 : i64, scratch_operands = 1 : i64, tpu.core_type = #tpu.core_type<tc>, window_params = [{transform_indices = @transform_0, window_bounds = array<i64: 1, 16, 16>}, {transform_indices = @transform_1, window_bounds = array<i64: 1, 1, 5>}, {pipeline_mode = #tpu.pipeline_mode<synchronous>, transform_indices = @transform_2, window_bounds = array<i64: 16, 32>}, {pipeline_mode = #tpu.pipeline_mode<synchronous>, transform_indices = @transform_3, window_bounds = array<i64: 16, 32>}, {pipeline_mode = #tpu.pipeline_mode<synchronous>, transform_indices = @transform_4, window_bounds = array<i64: 1, 32>}, {pipeline_mode = #tpu.pipeline_mode<synchronous>, transform_indices = @transform_5, window_bounds = array<i64: 5, 32>}, {pipeline_mode = #tpu.pipeline_mode<synchronous>, transform_indices = @transform_6, window_bounds = array<i64: 1, 32>}, {transform_indices = @transform_7, window_bounds = array<i64: 1, 1, 32>}, {transform_indices = @transform_8, window_bounds = array<i64: 1, 1, 32>}, {transform_indices = @transform_9, window_bounds = array<i64: 1, 32, 96>}, {transform_indices = @transform_10, window_bounds = array<i64: 1, 1, 96>}, {transform_indices = @transform_11, window_bounds = array<i64: 1, 32, 32>}, {transform_indices = @transform_12, window_bounds = array<i64: 1, 1, 32>}, {transform_indices = @transform_13, window_bounds = array<i64: 1, 1, 32>}, {transform_indices = @transform_14, window_bounds = array<i64: 1, 1, 32>}, {transform_indices = @transform_15, window_bounds = array<i64: 1, 32, 64>}, {transform_indices = @transform_16, window_bounds = array<i64: 1, 1, 64>}, {transform_indices = @transform_17, window_bounds = array<i64: 1, 64, 32>}, {transform_indices = @transform_18, window_bounds = array<i64: 1, 1, 32>}, {transform_indices = @transform_19, window_bounds = array<i64: 1, 16, 32>}, {transform_indices = @transform_20, window_bounds = array<i64: 1, 1, 2, 16, 16>}]} {
    %c0_i32 = arith.constant 0 : i32
    %0 = arith.cmpi eq, %arg1, %c0_i32 : i32
    %1 = arith.extui %0 : i1 to i32
    %c0_i32_0 = arith.constant 0 : i32
    %2 = arith.cmpi ne, %1, %c0_i32_0 : i32
    scf.if %2 {
      %c0_78 = arith.constant 0 : index
      %c0_79 = arith.constant 0 : index
      %c0_80 = arith.constant 0 : index
      %145 = vector.load %arg2[%c0_78, %c0_79, %c0_80] : memref<1x16x16xf32, #tpu.memory_space<vmem>>, vector<1x16x16xf32>
      %146 = vector.shape_cast %145 : vector<1x16x16xf32> to vector<16x16xf32>
      %c0_81 = arith.constant 0 : index
      %c0_82 = arith.constant 0 : index
      %147 = vector.load %arg5[%c0_81, %c0_82] : memref<16x32xf32, #tpu.memory_space<vmem>>, vector<16x32xf32>
      %cst_83 = arith.constant dense<0.000000e+00> : vector<16x32xf32>
      %148 = tpu.matmul %146, %147, %cst_83 {dimension_numbers = #tpu.dot_dimension_numbers<[1], [0], [0], [1], [0, 0, 1, 1], [], []>} : vector<16x16xf32>, vector<16x32xf32>, vector<16x32xf32> -> vector<16x32xf32>
      %c0_84 = arith.constant 0 : index
      %c0_85 = arith.constant 0 : index
      %149 = vector.load %arg6[%c0_84, %c0_85] : memref<1x32xf32, #tpu.memory_space<vmem>>, vector<1x32xf32>
      %150 = vector.broadcast %149 : vector<1x32xf32> to vector<16x32xf32>
      %151 = arith.addf %148, %150 : vector<16x32xf32>
      %c0_86 = arith.constant 0 : index
      %c0_87 = arith.constant 0 : index
      %c0_88 = arith.constant 0 : index
      %152 = vector.load %arg3[%c0_86, %c0_87, %c0_88] : memref<1x1x5xf32, #tpu.memory_space<vmem>>, vector<1x1x5xf32>
      %153 = vector.shape_cast %152 : vector<1x1x5xf32> to vector<1x5xf32>
      %c0_89 = arith.constant 0 : index
      %c0_90 = arith.constant 0 : index
      %154 = vector.load %arg7[%c0_89, %c0_90] : memref<5x32xf32, #tpu.memory_space<vmem>>, vector<5x32xf32>
      %cst_91 = arith.constant dense<0.000000e+00> : vector<1x32xf32>
      %155 = tpu.matmul %153, %154, %cst_91 {dimension_numbers = #tpu.dot_dimension_numbers<[1], [0], [0], [1], [0, 0, 1, 1], [], []>} : vector<1x5xf32>, vector<5x32xf32>, vector<1x32xf32> -> vector<1x32xf32>
      %c0_92 = arith.constant 0 : index
      %c0_93 = arith.constant 0 : index
      %156 = vector.load %arg8[%c0_92, %c0_93] : memref<1x32xf32, #tpu.memory_space<vmem>>, vector<1x32xf32>
      %157 = arith.addf %155, %156 : vector<1x32xf32>
      %c0_94 = arith.constant 0 : index
      %c0_95 = arith.constant 0 : index
      %158 = vector.load %arg4[%c0_94, %c0_95] : memref<16x32xf32, #tpu.memory_space<vmem>>, vector<16x32xf32>
      %159 = arith.addf %151, %158 : vector<16x32xf32>
      %160 = vector.broadcast %157 : vector<1x32xf32> to vector<16x32xf32>
      %161 = arith.addf %159, %160 : vector<16x32xf32>
      %c0_96 = arith.constant 0 : index
      %c0_97 = arith.constant 0 : index
      %162 = vector.load %arg23[%c0_96, %c0_97] : memref<16x32xf32, #tpu.memory_space<vmem>>, vector<16x32xf32>
      tpu.vector_store %arg23[%c0_96, %c0_97], %161 {strides = array<i32>} : memref<16x32xf32, #tpu.memory_space<vmem>>, vector<16x32xf32>,
    } else {
    }
    %c0 = arith.constant 0 : index
    %c0_1 = arith.constant 0 : index
    %3 = vector.load %arg23[%c0, %c0_1] : memref<16x32xf32, #tpu.memory_space<vmem>>, vector<16x32xf32>
    %c0_2 = arith.constant 0 : index
    %c0_3 = arith.constant 0 : index
    %c0_4 = arith.constant 0 : index
    %4 = vector.load %arg9[%c0_2, %c0_3, %c0_4] : memref<1x1x32xf32, #tpu.memory_space<vmem>>, vector<1x1x32xf32>
    %5 = vector.shape_cast %4 : vector<1x1x32xf32> to vector<1x32xf32>
    %c0_5 = arith.constant 0 : index
    %c0_6 = arith.constant 0 : index
    %c0_7 = arith.constant 0 : index
    %6 = vector.load %arg10[%c0_5, %c0_6, %c0_7] : memref<1x1x32xf32, #tpu.memory_space<vmem>>, vector<1x1x32xf32>
    %7 = vector.shape_cast %6 : vector<1x1x32xf32> to vector<1x32xf32>
    %cst = arith.constant dense<0.000000e+00> : vector<16xf32>
    %8 = vector.multi_reduction <add>, %3, %cst [1] : vector<16x32xf32> to vector<16xf32>
    %9 = vector.shape_cast %8 : vector<16xf32> to vector<16x1xf32>
    %cst_8 = arith.constant 3.200000e+01 : f32
    %10 = vector.broadcast %cst_8 : f32 to vector<16x1xf32>
    %11 = arith.divf %9, %10 : vector<16x1xf32>
    %12 = vector.broadcast %11 : vector<16x1xf32> to vector<16x32xf32>
    %13 = arith.subf %3, %12 : vector<16x32xf32>
    %14 = arith.mulf %13, %13 : vector<16x32xf32>
    %cst_9 = arith.constant dense<0.000000e+00> : vector<16xf32>
    %15 = vector.multi_reduction <add>, %14, %cst_9 [1] : vector<16x32xf32> to vector<16xf32>
    %16 = vector.shape_cast %15 : vector<16xf32> to vector<16x1xf32>
    %cst_10 = arith.constant 3.200000e+01 : f32
    %17 = vector.broadcast %cst_10 : f32 to vector<16x1xf32>
    %18 = arith.divf %16, %17 : vector<16x1xf32>
    %19 = vector.broadcast %11 : vector<16x1xf32> to vector<16x32xf32>
    %20 = arith.subf %3, %19 : vector<16x32xf32>
    %cst_11 = arith.constant 9.99999974E-6 : f32
    %21 = vector.broadcast %cst_11 : f32 to vector<16x1xf32>
    %22 = arith.addf %18, %21 : vector<16x1xf32>
    %23 = math.rsqrt %22 : vector<16x1xf32>
    %24 = vector.broadcast %23 : vector<16x1xf32> to vector<16x32xf32>
    %25 = arith.mulf %20, %24 : vector<16x32xf32>
    %26 = vector.broadcast %5 : vector<1x32xf32> to vector<16x32xf32>
    %27 = arith.mulf %25, %26 : vector<16x32xf32>
    %28 = vector.broadcast %7 : vector<1x32xf32> to vector<16x32xf32>
    %29 = arith.addf %27, %28 : vector<16x32xf32>
    %c0_12 = arith.constant 0 : index
    %c0_13 = arith.constant 0 : index
    %c0_14 = arith.constant 0 : index
    %30 = vector.load %arg11[%c0_12, %c0_13, %c0_14] : memref<1x32x96xf32, #tpu.memory_space<vmem>>, vector<1x32x96xf32>
    %31 = vector.shape_cast %30 : vector<1x32x96xf32> to vector<32x96xf32>
    %cst_15 = arith.constant dense<0.000000e+00> : vector<16x96xf32>
    %32 = tpu.matmul %29, %31, %cst_15 {dimension_numbers = #tpu.dot_dimension_numbers<[1], [0], [0], [1], [0, 0, 1, 1], [], []>} : vector<16x32xf32>, vector<32x96xf32>, vector<16x96xf32> -> vector<16x96xf32>
    %c0_16 = arith.constant 0 : index
    %c0_17 = arith.constant 0 : index
    %c0_18 = arith.constant 0 : index
    %33 = vector.load %arg12[%c0_16, %c0_17, %c0_18] : memref<1x1x96xf32, #tpu.memory_space<vmem>>, vector<1x1x96xf32>
    %34 = vector.shape_cast %33 : vector<1x1x96xf32> to vector<1x96xf32>
    %35 = vector.broadcast %34 : vector<1x96xf32> to vector<16x96xf32>
    %36 = arith.addf %32, %35 : vector<16x96xf32>
    %37 = vector.extract_strided_slice %36 {offsets = [0, 0], sizes = [16, 32], strides = [1, 1]} : vector<16x96xf32> to vector<16x32xf32>
    %cst_19 = arith.constant 2.500000e-01 : f32
    %38 = vector.broadcast %cst_19 : f32 to vector<16x32xf32>
    %39 = arith.mulf %37, %38 : vector<16x32xf32>
    %40 = vector.extract_strided_slice %36 {offsets = [0, 32], sizes = [16, 32], strides = [1, 1]} : vector<16x96xf32> to vector<16x32xf32>
    %41 = vector.extract_strided_slice %36 {offsets = [0, 64], sizes = [16, 32], strides = [1, 1]} : vector<16x96xf32> to vector<16x32xf32>
    %42 = vector.extract_strided_slice %39 {offsets = [0, 0], sizes = [16, 16], strides = [1, 1]} : vector<16x32xf32> to vector<16x16xf32>
    %43 = vector.extract_strided_slice %40 {offsets = [0, 0], sizes = [16, 16], strides = [1, 1]} : vector<16x32xf32> to vector<16x16xf32>
    %44 = vector.extract_strided_slice %41 {offsets = [0, 0], sizes = [16, 16], strides = [1, 1]} : vector<16x32xf32> to vector<16x16xf32>
    %45 = tpu.transpose %43, [1, 0] : vector<16x16xf32> -> vector<16x16xf32>
    %cst_20 = arith.constant dense<0.000000e+00> : vector<16x16xf32>
    %46 = tpu.matmul %42, %45, %cst_20 {dimension_numbers = #tpu.dot_dimension_numbers<[1], [0], [0], [1], [0, 0, 1, 1], [], []>} : vector<16x16xf32>, vector<16x16xf32>, vector<16x16xf32> -> vector<16x16xf32>
    %cst_21 = arith.constant dense<0xFF800000> : vector<16xf32>
    %47 = vector.multi_reduction <maximumf>, %46, %cst_21 [1] : vector<16x16xf32> to vector<16xf32>
    %48 = vector.shape_cast %47 : vector<16xf32> to vector<16x1xf32>
    %49 = vector.broadcast %48 : vector<16x1xf32> to vector<16x16xf32>
    %50 = arith.subf %46, %49 : vector<16x16xf32>
    %51 = math.exp %50 : vector<16x16xf32>
    %cst_22 = arith.constant dense<0.000000e+00> : vector<16xf32>
    %52 = vector.multi_reduction <add>, %51, %cst_22 [1] : vector<16x16xf32> to vector<16xf32>
    %53 = vector.shape_cast %52 : vector<16xf32> to vector<16x1xf32>
    %54 = vector.broadcast %53 : vector<16x1xf32> to vector<16x16xf32>
    %55 = arith.divf %51, %54 : vector<16x16xf32>
    %c0_23 = arith.constant 0 : index
    %c0_24 = arith.constant 0 : index
    %c0_25 = arith.constant 0 : index
    %c0_26 = arith.constant 0 : index
    %c0_27 = arith.constant 0 : index
    %56 = vector.load %arg22[%c0_23, %c0_24, %c0_25, %c0_26, %c0_27] : memref<1x1x2x16x16xf32, #tpu.memory_space<vmem>>, vector<1x1x1x16x16xf32>
    %57 = vector.shape_cast %56 : vector<1x1x1x16x16xf32> to vector<16x16xf32>
    %58 = vector.shape_cast %55 : vector<16x16xf32> to vector<1x1x1x16x16xf32>
    tpu.vector_store %arg22[%c0_23, %c0_24, %c0_25, %c0_26, %c0_27], %58 {strides = array<i32>} : memref<1x1x2x16x16xf32, #tpu.memory_space<vmem>>, vector<1x1x1x16x16xf32>,
    %cst_28 = arith.constant dense<0.000000e+00> : vector<16x16xf32>
    %59 = tpu.matmul %55, %44, %cst_28 {dimension_numbers = #tpu.dot_dimension_numbers<[1], [0], [0], [1], [0, 0, 1, 1], [], []>} : vector<16x16xf32>, vector<16x16xf32>, vector<16x16xf32> -> vector<16x16xf32>
    %60 = vector.extract_strided_slice %39 {offsets = [0, 16], sizes = [16, 16], strides = [1, 1]} : vector<16x32xf32> to vector<16x16xf32>
    %61 = vector.extract_strided_slice %40 {offsets = [0, 16], sizes = [16, 16], strides = [1, 1]} : vector<16x32xf32> to vector<16x16xf32>
    %62 = vector.extract_strided_slice %41 {offsets = [0, 16], sizes = [16, 16], strides = [1, 1]} : vector<16x32xf32> to vector<16x16xf32>
    %63 = tpu.transpose %61, [1, 0] : vector<16x16xf32> -> vector<16x16xf32>
    %cst_29 = arith.constant dense<0.000000e+00> : vector<16x16xf32>
    %64 = tpu.matmul %60, %63, %cst_29 {dimension_numbers = #tpu.dot_dimension_numbers<[1], [0], [0], [1], [0, 0, 1, 1], [], []>} : vector<16x16xf32>, vector<16x16xf32>, vector<16x16xf32> -> vector<16x16xf32>
    %cst_30 = arith.constant dense<0xFF800000> : vector<16xf32>
    %65 = vector.multi_reduction <maximumf>, %64, %cst_30 [1] : vector<16x16xf32> to vector<16xf32>
    %66 = vector.shape_cast %65 : vector<16xf32> to vector<16x1xf32>
    %67 = vector.broadcast %66 : vector<16x1xf32> to vector<16x16xf32>
    %68 = arith.subf %64, %67 : vector<16x16xf32>
    %69 = math.exp %68 : vector<16x16xf32>
    %cst_31 = arith.constant dense<0.000000e+00> : vector<16xf32>
    %70 = vector.multi_reduction <add>, %69, %cst_31 [1] : vector<16x16xf32> to vector<16xf32>
    %71 = vector.shape_cast %70 : vector<16xf32> to vector<16x1xf32>
    %72 = vector.broadcast %71 : vector<16x1xf32> to vector<16x16xf32>
    %73 = arith.divf %69, %72 : vector<16x16xf32>
    %c0_32 = arith.constant 0 : index
    %c0_33 = arith.constant 0 : index
    %c1 = arith.constant 1 : index
    %c0_34 = arith.constant 0 : index
    %c0_35 = arith.constant 0 : index
    %74 = vector.load %arg22[%c0_32, %c0_33, %c1, %c0_34, %c0_35] : memref<1x1x2x16x16xf32, #tpu.memory_space<vmem>>, vector<1x1x1x16x16xf32>
    %75 = vector.shape_cast %74 : vector<1x1x1x16x16xf32> to vector<16x16xf32>
    %76 = vector.shape_cast %73 : vector<16x16xf32> to vector<1x1x1x16x16xf32>
    tpu.vector_store %arg22[%c0_32, %c0_33, %c1, %c0_34, %c0_35], %76 {strides = array<i32>} : memref<1x1x2x16x16xf32, #tpu.memory_space<vmem>>, vector<1x1x1x16x16xf32>,
    %cst_36 = arith.constant dense<0.000000e+00> : vector<16x16xf32>
    %77 = tpu.matmul %73, %62, %cst_36 {dimension_numbers = #tpu.dot_dimension_numbers<[1], [0], [0], [1], [0, 0, 1, 1], [], []>} : vector<16x16xf32>, vector<16x16xf32>, vector<16x16xf32> -> vector<16x16xf32>
    %78 = tpu.concatenate %59, %77 in 1 : vector<16x16xf32>, vector<16x16xf32> -> vector<16x32xf32>
    %c0_37 = arith.constant 0 : index
    %c0_38 = arith.constant 0 : index
    %c0_39 = arith.constant 0 : index
    %79 = vector.load %arg13[%c0_37, %c0_38, %c0_39] : memref<1x32x32xf32, #tpu.memory_space<vmem>>, vector<1x32x32xf32>
    %80 = vector.shape_cast %79 : vector<1x32x32xf32> to vector<32x32xf32>
    %cst_40 = arith.constant dense<0.000000e+00> : vector<16x32xf32>
    %81 = tpu.matmul %78, %80, %cst_40 {dimension_numbers = #tpu.dot_dimension_numbers<[1], [0], [0], [1], [0, 0, 1, 1], [], []>} : vector<16x32xf32>, vector<32x32xf32>, vector<16x32xf32> -> vector<16x32xf32>
    %82 = arith.addf %3, %81 : vector<16x32xf32>
    %c0_41 = arith.constant 0 : index
    %c0_42 = arith.constant 0 : index
    %c0_43 = arith.constant 0 : index
    %83 = vector.load %arg14[%c0_41, %c0_42, %c0_43] : memref<1x1x32xf32, #tpu.memory_space<vmem>>, vector<1x1x32xf32>
    %84 = vector.shape_cast %83 : vector<1x1x32xf32> to vector<1x32xf32>
    %85 = vector.broadcast %84 : vector<1x32xf32> to vector<16x32xf32>
    %86 = arith.addf %82, %85 : vector<16x32xf32>
    %c0_44 = arith.constant 0 : index
    %c0_45 = arith.constant 0 : index
    %c0_46 = arith.constant 0 : index
    %87 = vector.load %arg15[%c0_44, %c0_45, %c0_46] : memref<1x1x32xf32, #tpu.memory_space<vmem>>, vector<1x1x32xf32>
    %88 = vector.shape_cast %87 : vector<1x1x32xf32> to vector<1x32xf32>
    %c0_47 = arith.constant 0 : index
    %c0_48 = arith.constant 0 : index
    %c0_49 = arith.constant 0 : index
    %89 = vector.load %arg16[%c0_47, %c0_48, %c0_49] : memref<1x1x32xf32, #tpu.memory_space<vmem>>, vector<1x1x32xf32>
    %90 = vector.shape_cast %89 : vector<1x1x32xf32> to vector<1x32xf32>
    %cst_50 = arith.constant dense<0.000000e+00> : vector<16xf32>
    %91 = vector.multi_reduction <add>, %86, %cst_50 [1] : vector<16x32xf32> to vector<16xf32>
    %92 = vector.shape_cast %91 : vector<16xf32> to vector<16x1xf32>
    %cst_51 = arith.constant 3.200000e+01 : f32
    %93 = vector.broadcast %cst_51 : f32 to vector<16x1xf32>
    %94 = arith.divf %92, %93 : vector<16x1xf32>
    %95 = vector.broadcast %94 : vector<16x1xf32> to vector<16x32xf32>
    %96 = arith.subf %86, %95 : vector<16x32xf32>
    %97 = arith.mulf %96, %96 : vector<16x32xf32>
    %cst_52 = arith.constant dense<0.000000e+00> : vector<16xf32>
    %98 = vector.multi_reduction <add>, %97, %cst_52 [1] : vector<16x32xf32> to vector<16xf32>
    %99 = vector.shape_cast %98 : vector<16xf32> to vector<16x1xf32>
    %cst_53 = arith.constant 3.200000e+01 : f32
    %100 = vector.broadcast %cst_53 : f32 to vector<16x1xf32>
    %101 = arith.divf %99, %100 : vector<16x1xf32>
    %102 = vector.broadcast %94 : vector<16x1xf32> to vector<16x32xf32>
    %103 = arith.subf %86, %102 : vector<16x32xf32>
    %cst_54 = arith.constant 9.99999974E-6 : f32
    %104 = vector.broadcast %cst_54 : f32 to vector<16x1xf32>
    %105 = arith.addf %101, %104 : vector<16x1xf32>
    %106 = math.rsqrt %105 : vector<16x1xf32>
    %107 = vector.broadcast %106 : vector<16x1xf32> to vector<16x32xf32>
    %108 = arith.mulf %103, %107 : vector<16x32xf32>
    %109 = vector.broadcast %88 : vector<1x32xf32> to vector<16x32xf32>
    %110 = arith.mulf %108, %109 : vector<16x32xf32>
    %111 = vector.broadcast %90 : vector<1x32xf32> to vector<16x32xf32>
    %112 = arith.addf %110, %111 : vector<16x32xf32>
    %c0_55 = arith.constant 0 : index
    %c0_56 = arith.constant 0 : index
    %c0_57 = arith.constant 0 : index
    %113 = vector.load %arg17[%c0_55, %c0_56, %c0_57] : memref<1x32x64xf32, #tpu.memory_space<vmem>>, vector<1x32x64xf32>
    %114 = vector.shape_cast %113 : vector<1x32x64xf32> to vector<32x64xf32>
    %cst_58 = arith.constant dense<0.000000e+00> : vector<16x64xf32>
    %115 = tpu.matmul %112, %114, %cst_58 {dimension_numbers = #tpu.dot_dimension_numbers<[1], [0], [0], [1], [0, 0, 1, 1], [], []>} : vector<16x32xf32>, vector<32x64xf32>, vector<16x64xf32> -> vector<16x64xf32>
    %c0_59 = arith.constant 0 : index
    %c0_60 = arith.constant 0 : index
    %c0_61 = arith.constant 0 : index
    %116 = vector.load %arg18[%c0_59, %c0_60, %c0_61] : memref<1x1x64xf32, #tpu.memory_space<vmem>>, vector<1x1x64xf32>
    %117 = vector.shape_cast %116 : vector<1x1x64xf32> to vector<1x64xf32>
    %118 = vector.broadcast %117 : vector<1x64xf32> to vector<16x64xf32>
    %119 = arith.addf %115, %118 : vector<16x64xf32>
    %120 = arith.mulf %119, %119 : vector<16x64xf32>
    %121 = arith.mulf %119, %120 : vector<16x64xf32>
    %cst_62 = arith.constant 4.471500e-02 : f32
    %122 = vector.broadcast %cst_62 : f32 to vector<16x64xf32>
    %123 = arith.mulf %122, %121 : vector<16x64xf32>
    %124 = arith.addf %119, %123 : vector<16x64xf32>
    %cst_63 = arith.constant 0.797884583 : f32
    %125 = vector.broadcast %cst_63 : f32 to vector<16x64xf32>
    %126 = arith.mulf %125, %124 : vector<16x64xf32>
    %127 = math.tanh %126 : vector<16x64xf32>
    %cst_64 = arith.constant 1.000000e+00 : f32
    %128 = vector.broadcast %cst_64 : f32 to vector<16x64xf32>
    %129 = arith.addf %128, %127 : vector<16x64xf32>
    %cst_65 = arith.constant 5.000000e-01 : f32
    %130 = vector.broadcast %cst_65 : f32 to vector<16x64xf32>
    %131 = arith.mulf %130, %129 : vector<16x64xf32>
    %132 = arith.mulf %119, %131 : vector<16x64xf32>
    %c0_66 = arith.constant 0 : index
    %c0_67 = arith.constant 0 : index
    %c0_68 = arith.constant 0 : index
    %133 = vector.load %arg19[%c0_66, %c0_67, %c0_68] : memref<1x64x32xf32, #tpu.memory_space<vmem>>, vector<1x64x32xf32>
    %134 = vector.shape_cast %133 : vector<1x64x32xf32> to vector<64x32xf32>
    %cst_69 = arith.constant dense<0.000000e+00> : vector<16x32xf32>
    %135 = tpu.matmul %132, %134, %cst_69 {dimension_numbers = #tpu.dot_dimension_numbers<[1], [0], [0], [1], [0, 0, 1, 1], [], []>} : vector<16x64xf32>, vector<64x32xf32>, vector<16x32xf32> -> vector<16x32xf32>
    %c0_70 = arith.constant 0 : index
    %c0_71 = arith.constant 0 : index
    %c0_72 = arith.constant 0 : index
    %136 = vector.load %arg20[%c0_70, %c0_71, %c0_72] : memref<1x1x32xf32, #tpu.memory_space<vmem>>, vector<1x1x32xf32>
    %137 = vector.shape_cast %136 : vector<1x1x32xf32> to vector<1x32xf32>
    %138 = vector.broadcast %137 : vector<1x32xf32> to vector<16x32xf32>
    %139 = arith.addf %135, %138 : vector<16x32xf32>
    %140 = arith.addf %86, %139 : vector<16x32xf32>
    %c0_73 = arith.constant 0 : index
    %c0_74 = arith.constant 0 : index
    %141 = vector.load %arg23[%c0_73, %c0_74] : memref<16x32xf32, #tpu.memory_space<vmem>>, vector<16x32xf32>
    tpu.vector_store %arg23[%c0_73, %c0_74], %140 {strides = array<i32>} : memref<16x32xf32, #tpu.memory_space<vmem>>, vector<16x32xf32>,
    %c0_75 = arith.constant 0 : index
    %c0_76 = arith.constant 0 : index
    %c0_77 = arith.constant 0 : index
    %142 = vector.load %arg21[%c0_75, %c0_76, %c0_77] : memref<1x16x32xf32, #tpu.memory_space<vmem>>, vector<1x16x32xf32>
    %143 = vector.shape_cast %142 : vector<1x16x32xf32> to vector<16x32xf32>
    %144 = vector.shape_cast %140 : vector<16x32xf32> to vector<1x16x32xf32>
    tpu.vector_store %arg21[%c0_75, %c0_76, %c0_77], %144 {strides = array<i32>} : memref<1x16x32xf32, #tpu.memory_space<vmem>>, vector<1x16x32xf32>,
    return
  }
  func.func @transform_0(%arg0: i32, %arg1: i32) -> (i32, i32, i32) {
    %c0_i32 = arith.constant 0 : i32
    %c0_i32_0 = arith.constant 0 : i32
    %c0_i32_1 = arith.constant 0 : i32
    return %arg0, %c0_i32, %c0_i32_0 : i32, i32, i32
  }
  func.func @transform_1(%arg0: i32, %arg1: i32) -> (i32, i32, i32) {
    %c0_i32 = arith.constant 0 : i32
    %c0_i32_0 = arith.constant 0 : i32
    %c0_i32_1 = arith.constant 0 : i32
    return %arg0, %c0_i32, %c0_i32_0 : i32, i32, i32
  }
  func.func @transform_2(%arg0: i32, %arg1: i32) -> (i32, i32) {
    %c0_i32 = arith.constant 0 : i32
    %c0_i32_0 = arith.constant 0 : i32
    %c0_i32_1 = arith.constant 0 : i32
    return %c0_i32, %c0_i32_0 : i32, i32
  }
  func.func @transform_3(%arg0: i32, %arg1: i32) -> (i32, i32) {
    %c0_i32 = arith.constant 0 : i32
    %c0_i32_0 = arith.constant 0 : i32
    %c0_i32_1 = arith.constant 0 : i32
    return %c0_i32, %c0_i32_0 : i32, i32
  }
  func.func @transform_4(%arg0: i32, %arg1: i32) -> (i32, i32) {
    %c0_i32 = arith.constant 0 : i32
    %c0_i32_0 = arith.constant 0 : i32
    %c0_i32_1 = arith.constant 0 : i32
    return %c0_i32, %c0_i32_0 : i32, i32
  }
  func.func @transform_5(%arg0: i32, %arg1: i32) -> (i32, i32) {
    %c0_i32 = arith.constant 0 : i32
    %c0_i32_0 = arith.constant 0 : i32
    %c0_i32_1 = arith.constant 0 : i32
    return %c0_i32, %c0_i32_0 : i32, i32
  }
  func.func @transform_6(%arg0: i32, %arg1: i32) -> (i32, i32) {
    %c0_i32 = arith.constant 0 : i32
    %c0_i32_0 = arith.constant 0 : i32
    %c0_i32_1 = arith.constant 0 : i32
    return %c0_i32, %c0_i32_0 : i32, i32
  }
  func.func @transform_7(%arg0: i32, %arg1: i32) -> (i32, i32, i32) {
    %c0_i32 = arith.constant 0 : i32
    %c0_i32_0 = arith.constant 0 : i32
    %c0_i32_1 = arith.constant 0 : i32
    return %arg1, %c0_i32, %c0_i32_0 : i32, i32, i32
  }
  func.func @transform_8(%arg0: i32, %arg1: i32) -> (i32, i32, i32) {
    %c0_i32 = arith.constant 0 : i32
    %c0_i32_0 = arith.constant 0 : i32
    %c0_i32_1 = arith.constant 0 : i32
    return %arg1, %c0_i32, %c0_i32_0 : i32, i32, i32
  }
  func.func @transform_9(%arg0: i32, %arg1: i32) -> (i32, i32, i32) {
    %c0_i32 = arith.constant 0 : i32
    %c0_i32_0 = arith.constant 0 : i32
    %c0_i32_1 = arith.constant 0 : i32
    return %arg1, %c0_i32, %c0_i32_0 : i32, i32, i32
  }
  func.func @transform_10(%arg0: i32, %arg1: i32) -> (i32, i32, i32) {
    %c0_i32 = arith.constant 0 : i32
    %c0_i32_0 = arith.constant 0 : i32
    %c0_i32_1 = arith.constant 0 : i32
    return %arg1, %c0_i32, %c0_i32_0 : i32, i32, i32
  }
  func.func @transform_11(%arg0: i32, %arg1: i32) -> (i32, i32, i32) {
    %c0_i32 = arith.constant 0 : i32
    %c0_i32_0 = arith.constant 0 : i32
    %c0_i32_1 = arith.constant 0 : i32
    return %arg1, %c0_i32, %c0_i32_0 : i32, i32, i32
  }
  func.func @transform_12(%arg0: i32, %arg1: i32) -> (i32, i32, i32) {
    %c0_i32 = arith.constant 0 : i32
    %c0_i32_0 = arith.constant 0 : i32
    %c0_i32_1 = arith.constant 0 : i32
    return %arg1, %c0_i32, %c0_i32_0 : i32, i32, i32
  }
  func.func @transform_13(%arg0: i32, %arg1: i32) -> (i32, i32, i32) {
    %c0_i32 = arith.constant 0 : i32
    %c0_i32_0 = arith.constant 0 : i32
    %c0_i32_1 = arith.constant 0 : i32
    return %arg1, %c0_i32, %c0_i32_0 : i32, i32, i32
  }
  func.func @transform_14(%arg0: i32, %arg1: i32) -> (i32, i32, i32) {
    %c0_i32 = arith.constant 0 : i32
    %c0_i32_0 = arith.constant 0 : i32
    %c0_i32_1 = arith.constant 0 : i32
    return %arg1, %c0_i32, %c0_i32_0 : i32, i32, i32
  }
  func.func @transform_15(%arg0: i32, %arg1: i32) -> (i32, i32, i32) {
    %c0_i32 = arith.constant 0 : i32
    %c0_i32_0 = arith.constant 0 : i32
    %c0_i32_1 = arith.constant 0 : i32
    return %arg1, %c0_i32, %c0_i32_0 : i32, i32, i32
  }
  func.func @transform_16(%arg0: i32, %arg1: i32) -> (i32, i32, i32) {
    %c0_i32 = arith.constant 0 : i32
    %c0_i32_0 = arith.constant 0 : i32
    %c0_i32_1 = arith.constant 0 : i32
    return %arg1, %c0_i32, %c0_i32_0 : i32, i32, i32
  }
  func.func @transform_17(%arg0: i32, %arg1: i32) -> (i32, i32, i32) {
    %c0_i32 = arith.constant 0 : i32
    %c0_i32_0 = arith.constant 0 : i32
    %c0_i32_1 = arith.constant 0 : i32
    return %arg1, %c0_i32, %c0_i32_0 : i32, i32, i32
  }
  func.func @transform_18(%arg0: i32, %arg1: i32) -> (i32, i32, i32) {
    %c0_i32 = arith.constant 0 : i32
    %c0_i32_0 = arith.constant 0 : i32
    %c0_i32_1 = arith.constant 0 : i32
    return %arg1, %c0_i32, %c0_i32_0 : i32, i32, i32
  }
  func.func @transform_19(%arg0: i32, %arg1: i32) -> (i32, i32, i32) {
    %c0_i32 = arith.constant 0 : i32
    %c0_i32_0 = arith.constant 0 : i32
    %c0_i32_1 = arith.constant 0 : i32
    return %arg0, %c0_i32, %c0_i32_0 : i32, i32, i32
  }
  func.func @transform_20(%arg0: i32, %arg1: i32) -> (i32, i32, i32, i32, i32) {
    %c0_i32 = arith.constant 0 : i32
    %c0_i32_0 = arith.constant 0 : i32
    %c0_i32_1 = arith.constant 0 : i32
    %c0_i32_2 = arith.constant 0 : i32
    return %arg0, %arg1, %c0_i32, %c0_i32_0, %c0_i32_1 : i32, i32, i32, i32, i32
  }
}

</mosaic_0001>

<bundles_post_ra>
// kernel: recorder_forward.1
= control target key start
LH: loop header
LB: loop body
LE: loop exit
PB: predicated region body
PF: predicated region fallthrough
CT: control target
= control target key end

     0   :  { %s3418_s0 = inlined_call_operand.vmem [shape: f32[2,16,16], index: 0, kind: input, shape index: {}]   ;;  %s3419_s1 = inlined_call_operand.vmem [shape: f32[2,1,5], index: 1, kind: input, shape index: {}]   ;;  %s3420_s2 = inlined_call_operand.vmem [shape: f32[16,32], index: 2, kind: input, shape index: {}]   ;;  %s3421_s3 = inlined_call_operand.vmem [shape: f32[16,32], index: 3, kind: input, shape index: {}]   ;;  %s3422_s4 = inlined_call_operand.vmem [shape: f32[1,32], index: 4, kind: input, shape index: {}]   ;;  %s3423_s5 = inlined_call_operand.vmem [shape: f32[5,32], index: 5, kind: input, shape index: {}]   ;;  %s3424_s6 = inlined_call_operand.vmem [shape: f32[1,32], index: 6, kind: input, shape index: {}]   ;;  %s3425_s7 = inlined_call_operand.vmem [shape: f32[2,1,32], index: 7, kind: input, shape index: {}]   ;;  %s3426_s8 = inlined_call_operand.vmem [shape: f32[2,1,32], index: 8, kind: input, shape index: {}]   ;;  %s3427_s9 = inlined_call_operand.vmem [shape: f32[2,32,96], index: 9, kind: input, shape index: {}]   ;;  %s3428_s10 = inlined_call_operand.vmem [shape: f32[2,1,96], index: 10, kind: input, shape index: {}]   ;;  %s3429_s11 = inlined_call_operand.vmem [shape: f32[2,32,32], index: 11, kind: input, shape index: {}]   ;;  %s3430_s12 = inlined_call_operand.vmem [shape: f32[2,1,32], index: 12, kind: input, shape index: {}]   ;;  %s3431_s13 = inlined_call_operand.vmem [shape: f32[2,1,32], index: 13, kind: input, shape index: {}]   ;;  %s3432_s14 = inlined_call_operand.vmem [shape: f32[2,1,32], index: 14, kind: input, shape index: {}]   ;;  %s3433_s15 = inlined_call_operand.vmem [shape: f32[2,32,64], index: 15, kind: input, shape index: {}]   ;;  %s3434_s16 = inlined_call_operand.vmem [shape: f32[2,1,64], index: 16, kind: input, shape index: {}]   ;;  %s3435_s17 = inlined_call_operand.vmem [shape: f32[2,64,32], index: 17, kind: input, shape index: {}]   ;;  %s3436_s18 = inlined_call_operand.vmem [shape: f32[2,1,32], index: 18, kind: input, shape index: {}]   ;;  %s3437_s19 = inlined_call_operand.hbm [shape: f32[2,16,32], index: 19, kind: output, shape index: {0}]   ;;  %s3438_s20 = inlined_call_operand.hbm [shape: f32[2,2,2,16,16], index: 20, kind: output, shape index: {1}]  }
   0x1   :  { %3467 = sst [smem:[#allocation29_spill]] %s3418_s0 }
   0x2   :  { %3468 = sst [smem:[#allocation30_spill]] %s3419_s1 }
   0x3   :  { %3469 = sst [smem:[#allocation31_spill]] %s3420_s2 }
   0x4   :  { %3470 = sst [smem:[#allocation32_spill]] %s3421_s3 }
   0x5   :  { %3471 = sst [smem:[#allocation33_spill]] %s3422_s4 }
   0x6   :  { %3472 = sst [smem:[#allocation34_spill]] %s3423_s5 }
   0x7   :  { %3473 = sst [smem:[#allocation35_spill]] %s3424_s6 }
   0x8   :  { %3474 = sst [smem:[#allocation36_spill]] %s3427_s9 }
   0x9   :  { %3475 = sst [smem:[#allocation37_spill]] %s3429_s11 }
   0xa   :  { %3476 = sst [smem:[#allocation38_spill]] %s3430_s12 }
   0xb   :  { %3477 = sst [smem:[#allocation39_spill]] %s3431_s13 }
   0xc   :  { %3478 = sst [smem:[#allocation40_spill]] %s3433_s15 }
   0xd   :  { %3479 = sst [smem:[#allocation41_spill]] %s3434_s16 }
   0xe   :  { %3480 = sst [smem:[#allocation42_spill]] %s3435_s17 }
   0xf   :  { %3481 = sst [smem:[#allocation43_spill]] %s3436_s18 }
  0x10   :  { %3482 = sst [smem:[#allocation44_spill]] %s3437_s19 }
  0x11   :  { %3483 = sst [smem:[#allocation45_spill]] %s3438_s20 }
  0x12   :  { %26 = vsyncpa [#allocation4], 0 }
  0x13   :  { %28 = vsyncpa [#allocation4 + $0x1], 0 }
  0x14   :  { %29 = vsyncpa [#allocation6], 0 }
  0x15   :  { %31 = vsyncpa [#allocation6 + $0x1], 0  ;;  %s2936_s1 = smov 0   ;;  %s2938_s22 = smov 0  }
  0x16   :  { %s2940_s23 = smov 0   ;;  %s2942_s24 = smov 0  }
  0x17   :  { %s2944_s2 = smov 0   ;;  %s2946_s25 = smov 0  }
  0x18   :  { %s2948_s3 = smov 0   ;;  %s2950_s26 = smov 0  }
  0x19   :  { %s2952_s27 = smov 0   ;;  %s2954_s28 = smov 0  }
  0x1a   :  { %s2956_s4 = smov 0  }
  0x1b LB: > { %3484 = sst [smem:[#allocation9_spill]] %s2777_s1  ;;  %s2235_s29 = sadd.s32 4294967295, %s2817_s4   ;;  %s2817_s4 = sphi %s2956_s4, %s37_s4   ;;  %s2813_s28 = sphi %s2954_s28, %s3563_s28   ;;  %s2809_s27 = sphi %s2952_s27, %s3562_s27   ;;  %s2805_s26 = sphi %s2950_s26, %s3561_s26   ;;  %s2801_s3 = sphi %s2948_s3, %s3560_s3   ;;  %s2797_s25 = sphi %s2946_s25, %s3559_s25   ;;  %s2793_s2 = sphi %s2944_s2, %s3558_s2   ;;  %s2789_s24 = sphi %s2942_s24, %s3557_s24   ;;  %s2785_s23 = sphi %s2940_s23, %s3556_s23   ;;  %s2781_s22 = sphi %s2938_s22, %s3555_s22   ;;  %s2777_s1 = sphi %s2936_s1, %s3554_s1  }
  0x1c   : > { %3485 = sst [smem:[#allocation10_spill]] %s2781_s22  ;;  %s2236_s30 = sadd.s32 4294967294, %s2817_s4  }
  0x1d   : > { %3486 = sst [smem:[#allocation11_spill]] %s2785_s23  ;;  %s46_s0 = sadd.s32 1, %s2809_s27 }
  0x1e   : > { %3487 = sst [smem:[#allocation12_spill]] %s2789_s24  ;;  %s49_s21 = sadd.s32 1, %s2813_s28 }
  0x1f   : > { %3488 = sst [smem:[#allocation13_spill]] %s2793_s2  ;;  %p47_p0 = scmp.ge.s32.totalorder %s46_s0, 2 }
  0x20   : > { %3489 = sst [smem:[#allocation14_spill]] %s2797_s25  ;;  %s525_s19 = sadd.s32 1, %s2797_s25 }
  0x21   : > { %3490 = sst [smem:[#allocation15_spill]] %s2801_s3  ;;  %p535_p1 = scmp.ne.s32.totalorder %s2797_s25, %s2793_s2 }
  0x22   : > { %3491 = sst [smem:[#allocation16_spill]] %s2805_s26  ;;  %p2998_p2 = scmp.eq.s32.totalorder %s2235_s29, 3 }
  0x23   : > { %3492 = sst [smem:[#allocation17_spill]] %s2809_s27  ;;  %s3565_s0 = smov (%p47_p0, %s46_s0), 0 }
  0x24   : > { %3493 = sst [smem:[#allocation18_spill]] %s2813_s28  ;;  %s3567_s21 = smov (!%p47_p0, %s49_s21), %s2813_s28 }
  0x25   : > { %3494 = sst [smem:[#allocation19_spill]] %s2817_s4  ;;  %p3007_p3 = por %p2998_p2, %p535_p1 }
  0x26   : > { %3496 = sst [smem:[#allocation20_spill]] %s3565_s0  ;;  %p541_p4 = scmp.ne.s32.totalorder %s2793_s2, %s2789_s24 }
  0x27   : > { %s3497_s6 = scalar_select %p3007_p3, 1, 0 }
  0x28   : > { %p51_p5 = scmp.ge.s32.totalorder %s3567_s21, 2  ;;  %p3013_p6 = scmp.eq.s32.totalorder %s2236_s30, 3 }
  0x29   : > { %3498 = sst [smem:[#allocation21_spill]] %s3497_s6  ;;  %s549_s5 = ssub.s32 %s2809_s27, %s3565_s0 }
  0x2a   : > { %s553_s17 = sadd.s32 1, %s2785_s23  ;;  %s3569_s21 = smov (%p51_p5, %s3567_s21), 0 }
  0x2b   : > { %3500 = sst [smem:[#allocation22_spill]] %s3569_s21  ;;  %p3024_p7 = por %p3013_p6, %p541_p4 }
  0x2c   : > { %p563_p8 = scmp.ne.s32.totalorder %s2785_s23, %s2781_s22  ;;  %s522_s24 = ssub.s32 %s2813_s28, %s3569_s21 }
  0x2d   : > { %s3501_s18 = scalar_select %p3024_p7, 1, 0 }
  0x2e   : > { %p569_p9 = scmp.ne.s32.totalorder %s2781_s22, %s2777_s1  ;;  %p523_p10 = scmp.eq.s32.totalorder %s522_s24, 0 }
  0x2f   : > { %3502 = sst [smem:[#allocation23_spill]] %s3501_s18  ;;  %s550_s30 = sor.u32 %s549_s5, %s522_s24 }
  0x30   : > { %p551_p11 = scmp.eq.s32.totalorder %s550_s30, 0  ;;  %p3036_p12 = por %p563_p8, %p2998_p2 }
  0x31   : > { %s3041_s0 = scalar_select %p523_p10, %s2797_s25, %s525_s19  }
  0x32   : > { %s3503_s6 = scalar_select %p3036_p12, 1, 0 }
  0x33   : > { %3505 = sst [smem:[#allocation25_spill]] %s3041_s0  ;;  %p3048_p13 = por %p569_p9, %p3013_p6 }
  0x34   : > { %3504 = sst [smem:[#allocation24_spill]] %s3503_s6  ;;  %p2239_p0 = scmp.ge.s32.totalorder %s2817_s4, 1 }
  0x35   : > { %s3044_s27 = scalar_select %p551_p11, %s2785_s23, %s553_s17  }
  0x36   : > { %s3507_s16 = scalar_select %p3048_p13, 1, 0 }
  0x37   : > { %3506 = sst [smem:[#allocation26_spill]] %s3044_s27  ;;  %p697_p1 = scmp.lt.s32.totalorder %s2817_s4, 5 }
  0x38   : > { %3508 = sst [smem:[#allocation27_spill]] %s3507_s16 }
  0x39   : > { %p698_p4 = pnand %p2239_p0, %p697_p1 }
  0x3b   : > { %701 = sbr.rel (%p698_p4) target bundleno = 2869 (0xb35), region = 96 }
  0x42   : > { %s3448_s5 = sand.u32 1, %s2793_s2   ;;  %s3449_s17 = sand.u32 1, %s2781_s22  }
  0x43   : > { %s2240_s19 = sshll.u32 %s3448_s5, 4  ;;  %s2241_s20 = sshll.u32 %s3449_s17, 5 }
  0x44   : > { %p807_p2 = scmp.lt.s32.totalorder %s2805_s26, 1  ;;  %p815_p5 = scmp.lt.s32.totalorder %s2801_s3, 1 }
  0x45   : > { %s3510_s27 = sld [smem:[#allocation29_spill]]  ;;  %s3511_s9 = sld [smem:[#allocation36_spill]] }
  0x46   : > { %s3063_s24 = scalar_select %p807_p2, %s2805_s26, 1 }
  0x47   : > { %s3066_s29 = scalar_select %p815_p5, %s2801_s3, 1 }
  0x48   : > { %s2297_s30 = sshll.u32 %s3063_s24, 4  ;;  %s3512_s11 = sld [smem:[#allocation37_spill]] }
  0x49   : > { %s2298_s22 = sshll.u32 %s3066_s29, 5  ;;  %s842_s18 = scalar_lea.vmem %s3432_s14, %s3066_s29 }
  0x4a   : > { %s3516_s5 = sld [smem:[#allocation40_spill]]  ;;  %s3518_s2 = sld [smem:[#allocation43_spill]] }
  0x4b   : > { %s3076_s23 = scalar_lea.vmem %s3510_s27, %s2297_s30  ;;  %s3090_s15 = scalar_lea.vmem %s3511_s9, %s2298_s22 }
  0x4c   : > { %s3517_s9 = sld [smem:[#allocation41_spill]]  ;;  %s3519_s6 = sld [smem:[#allocation42_spill]] }
  0x4d   : > { %s3132_s3 = scalar_lea.vmem [#allocation3], %s2240_s19  ;;  %s3134_s26 = scalar_lea.vmem [#allocation5], %s2241_s20 }
  0x4e   : > { %s3099_s17 = scalar_lea.vmem %s3512_s11, %s2298_s22 }
  0x4f   : > { %3513 = sst [smem:[#allocation28_spill]] %s3099_s17  ;;  %s2301_s17 = sshll.u32 %s3066_s29, 6 }
  0x50   : > { %s3116_s25 = scalar_lea.vmem %s3516_s5, %s2298_s22  ;;  %s858_s12 = scalar_lea.vmem %s3518_s2, %s3066_s29 }
  0x51   : > { %s3520_s22 = sld [smem:[#allocation15_spill]] }
  0x52   : > { %s850_s11 = scalar_lea.vmem %s3517_s9, %s3066_s29  ;;  %s3130_s13 = scalar_lea.vmem %s3519_s6, %s2301_s17 }
  0x57   : > { %p2252_p6 = scmp.ne.s32.totalorder %s3520_s22, 0 }
  0x58   : > { %s3521_s9 = sld [smem:[#allocation32_spill]] (!%p2252_p6)  ;;  %v863_v2 = vld [vmem:[%s3076_s23] sm:$0xff] (!%p2252_p6)  ;;  %vm874_vm0 = vcmask (!%p2252_p6), 130048   ;;  %vm963_vm1 = vcmask (!%p2252_p6), 1044480   ;;  %v2819_v4 = vmov (!%p2252_p6), 0.0   ;;  %s3522_s20 = sld [smem:[#allocation34_spill]] (!%p2252_p6)  ;;  %v1041_v8 = vlaneseq (!%p2252_p6) }
  0x59   : > { %862 = sbr.rel (%p2252_p6) target bundleno = 321 (0x141), region = 100  ;;  %2360 = vmatprep.subr.mxu1 (!%p2252_p6), %v2819_v4  ;;  %2357 = vmatprep.mubr.msk.f32.mxu0 (!%p2252_p6), %vm874_vm0, %v863_v2  ;;  %s3523_s0 = sld [smem:[#allocation30_spill]] (!%p2252_p6)  ;;  %vm2820_vm2 = vmmov (!%p2252_p6), 0   ;;  %vm959_vm3 = vcmask (!%p2252_p6), 39936   ;;  %v864_v7 = vld [vmem:[%s3076_s23 + $0x8] sm:$0xff] (!%p2252_p6)  ;;  %vm1047_vm4 = vcmask (!%p2252_p6), 261120  }
  0x5a   : > { %2362 = vmatprep.mubr.msk.f32.mxu1 (!%p2252_p6), %vm2820_vm2, %v2819_v4  ;;  %v1042_v9 = vshrl.u32 (!%p2252_p6), %v1041_v8, 7  ;;  %s3525_s30 = sld [smem:[#allocation35_spill]] (!%p2252_p6)  ;;  %s3526_s28 = sld [smem:[#allocation33_spill]] (!%p2252_p6) }
  0x5b   : > { %s3527_s23 = sld [smem:[#allocation31_spill]] (!%p2252_p6) }
  0x5c   : > { %v1043_v13 = vsub.s32 (!%p2252_p6), 0, %v1042_v9 }
  0x5e   : > { %v865_v0 = vld [vmem:[%s3521_s9] sm:$0xff] (!%p2252_p6)  ;;  %v866_v1 = vld [vmem:[%s3521_s9 + $0x8] sm:$0xff] (!%p2252_p6) }
  0x5f   : > { %v2445_v3 = vpack.c.bf16 (!%p2252_p6), %v866_v1, %v865_v0  ;;  %v957_v5 = vld [vmem:[%s3522_s20] sm:$0x1f] (!%p2252_p6)  ;;  %s3524_s16 = scalar_lea.vmem (!%p2252_p6), %s3523_s0, %s3063_s24 }
  0x60   : > { %v956_v6 = vld [vmem:[%s3524_s16] sm:$0x1]  ;;  %2361 = vmatpush3.msk.msra.mxu1 %vm963_vm1, %v957_v5 }
  0x61   : > { %2446 = vmatprep.subr.bf16.mxu0 %v2445_v3  ;;  %2363 = vmatmul.mubr.msk.f32.vlgmr.msra.gmra.mrb[0].mxu1 %vm959_vm3, %v956_v6  ;;  %v958_v10 = vld [vmem:[%s3525_s30] sm:$0x1]  ;;  %s3528_s6 = smov %s3527_s23  ;;  %v1038_v17 = vld [vmem:[%s3527_s23 + $0x8] sm:$0xff] }
  0x62   : > { %2448 = vmatpush3.bf16.msra.mxu0 %v2445_v3  ;;  %v2253_v15 = vld [vmem:[%s3526_s28] ss:$0 sm:$0xff] }
  0x63   : > { %v1037_v21 = vld [vmem:[%s3528_s6] sm:$0xff] }
  0x65   : > { %2358 = vmatmul.mubr.msk.f32.vlgmr.msra.gmra.mrb[0].mxu0 %vm874_vm0, %v864_v7 }
 0x134   : > { %v1033_v11 = vpop.f32.mrb[0].mxu1 }
 0x135   : > { %v1034_v12 = vadd.f32 %v1033_v11, %v958_v10  ;;  %v2364_v14 = vpop.f32.mrb[1].mxu1 }
 0x137   : > { %v1044_v19 = vrot.slane %v1034_v12, %v1043_v13 }
 0x138   : > { %v2359_v16 = vpop.f32.mrb[0].mxu0 }
 0x139   : > { %v953_v18 = vadd.f32 %v2359_v16, %v2253_v15  ;;  %v947_v20 = vpop.f32.mrb[1].mxu0 }
 0x13a   : > { %v948_v22 = vadd.f32 %v2253_v15, %v947_v20 }
 0x13b   : > { %v1040_v23 = vadd.f32 %v1038_v17, %v953_v18 }
 0x13c   : > { %v1039_v24 = vadd.f32 %v1037_v21, %v948_v22 }
 0x13d   : > { %v1046_v25 = vadd.f32 %v1044_v19, %v1040_v23 }
 0x13e   : > { %v1045_v26 = vadd.f32 %v1044_v19, %v1039_v24 }
 0x13f   : > { %1049 = vst.msk [vmem:[#allocation2 + $0x8] sm:$0xff] %vm1047_vm4, %v1046_v25 }
 0x140   : > { %1048 = vst.msk [vmem:[#allocation2] sm:$0xff] %vm1047_vm4, %v1045_v26 }
 0x141 PF: > { %vm1054_vm5 = vcmask 261120   ;;  %v1098_v41 = vld [vmem:[%s3090_s15] sm:$0xff]  ;;  %v1099_v42 = vld [vmem:[%s3090_s15 + $0x8] sm:$0xff]  ;;  %v1100_v43 = vld [vmem:[%s3090_s15 + $0x10] sm:$0xff]  ;;  %s3530_s16 = scalar_lea.vmem %s3426_s8, %s3066_s29  ;;  %s3531_s30 = scalar_lea.vmem %s3428_s10, %s3066_s29  ;;  %vm1198_vm6 = vcmask 130048   ;;  %vm1873_vm8 = vcmask 523264  }
 0x142   : > { %v2449_v44 = vpack.c.bf16 %v1099_v42, %v1098_v41  ;;  %v1101_v45 = vld [vmem:[%s3090_s15 + $0x18] sm:$0xff]  ;;  %s3529_s15 = scalar_lea.vmem %s3425_s7, %s3066_s29  ;;  %v2259_v56 = vld [vmem:[%s3530_s16] ss:$0 sm:$0xff]  ;;  %s2821_s24 = smov 80   ;;  %vm2458_vm7 = vmpackc.low %vm1198_vm6, %vm1198_vm6 }
 0x143   : > { %v2453_v46 = vpack.c.bf16 %v1101_v45, %v1100_v43  ;;  %v2258_v54 = vld [vmem:[%s3529_s15] ss:$0 sm:$0xff]  ;;  %s2822_s22 = smov 96   ;;  %s2823_s28 = smov 112  }
 0x144   : > { %2450 = vmatprep.subr.bf16.mxu1 %v2449_v44  ;;  %v2260_v63 = vld [vmem:[%s3531_s30] ss:$0 sm:$0xff]  ;;  %s2824_s21 = smov 48   ;;  %s2825_s5 = smov 64  }
 0x145   : > { %2452 = vmatpush3.bf16.msra.mxu1 %v2449_v44  ;;  %s3532_s23 = sld [smem:[#allocation28_spill]]  ;;  %s2826_s2 = smov 16  }
 0x146   : > { %v3169_v28 = vld [vmem:[#allocation2 + $0x8] sm:$0xff]  ;;  %2454 = vmatprep.subr.bf16.mxu1 %v2453_v46  ;;  %s3533_s17 = sld [smem:[#allocation38_spill]]  ;;  %s3535_s16 = sld [smem:[#allocation39_spill]] }
 0x147   : > { %v3167_v27 = vld [vmem:[#allocation2] sm:$0xff]  ;;  %v1058_v30 = vsel %vm1054_vm5, %v3169_v28, 0.0  ;;  %s1998_s19 = sshll.u32 %s3134_s26, 4  ;;  %s3296_s19 = int_to_ptr.vmem [resolvable:$true] %s1998_s19 }
 0x148   : > { %v1055_v29 = vsel %vm1054_vm5, %v3167_v27, 0.0 }
 0x149   : > { %1056 = vadd.xlane.f32.xlu0 %v1055_v29  ;;  %2456 = vmatpush3.bf16.msra.mxu1 %v2453_v46 }
 0x14c   : > { %s3534_s15 = scalar_lea.vmem %s3533_s17, %s3066_s29  ;;  %s3536_s1 = scalar_lea.vmem %s3535_s16, %s3066_s29 }
 0x14d   : > { %1059 = vadd.xlane.f32.xlu0 %v1058_v30 }
 0x1d6   : > { %v1057_v31 = vpop.xlane.xlu0 %1056 }
 0x1d7   : > { %v1062_v32 = vmul.f32 0.03125, %v1057_v31 }
 0x1d9   : > { %v1064_v33 = vsub.f32 %v3167_v27, %v1062_v32 }
 0x1da   : > { %v1060_v34 = vpop.xlane.xlu0 %1059 }
 0x1db   : > { %v1063_v35 = vmul.f32 0.03125, %v1060_v34  ;;  %v1066_v36 = vmul.f32 %v1064_v33, %v1064_v33 }
 0x1dd   : > { %v1065_v37 = vsub.f32 %v3169_v28, %v1063_v35  ;;  %v1068_v38 = vsel %vm1054_vm5, %v1066_v36, 0.0 }
 0x1de   : > { %1069 = vadd.xlane.f32.xlu1 %v1068_v38 }
 0x1df   : > { %v1067_v39 = vmul.f32 %v1065_v37, %v1065_v37 }
 0x1e1   : > { %v1071_v40 = vsel %vm1054_vm5, %v1067_v39, 0.0 }
 0x1e2   : > { %1072 = vadd.xlane.f32.xlu1 %v1071_v40 }
 0x26b   : > { %v1070_v47 = vpop.xlane.xlu1 %1069 }
 0x26c   : > { %v1074_v48 = vmul.f32 0.03125, %v1070_v47 }
 0x26e   : > { %v1076_v49 = vadd.f32 1e-05, %v1074_v48 }
 0x26f   : > { %v1073_v50 = vpop.xlane.xlu1 %1072 }
 0x270   : > { %2639 = vrsqrt.f32 %v1076_v49  ;;  %v1075_v51 = vmul.f32 0.03125, %v1073_v50 }
 0x272   : > { %v1077_v52 = vadd.f32 1e-05, %v1075_v51 }
 0x274   : > { %2641 = vrsqrt.f32 %v1077_v52 }
 0x27a   : > { %v2640_v53 = vpop.eup %2639 }
 0x27b   : > { %v1080_v55 = vmul.f32 %v2640_v53, %v1064_v33 }
 0x27d   : > { %v1088_v57 = vmul.f32 %v2258_v54, %v1080_v55 }
 0x27e   : > { %v2642_v58 = vpop.eup %2641 }
 0x27f   : > { %v1081_v59 = vmul.f32 %v2642_v58, %v1065_v37  ;;  %v1096_v60 = vadd.f32 %v2259_v56, %v1088_v57 }
 0x281   : > { %v1089_v61 = vmul.f32 %v2258_v54, %v1081_v59  ;;  %2373 = vmatprep.mubr.msk.f32.mxu1 %vm1054_vm5, %v1096_v60 }
 0x283   : > { %v1097_v62 = vadd.f32 %v2259_v56, %v1089_v61 }
 0x285   : > { %2374 = vmatmul.mubr.msk.f32.vlgmr.msra.gmra.mrb[0].mxu1 %vm1054_vm5, %v1097_v62 }
 0x358   : > { %v2375_v0 = vpop.f32.mrb[0].mxu1 }
 0x359   : > { %v1187_v1 = vadd.f32 %v2375_v0, %v2260_v63  ;;  %v1181_v2 = vpop.f32.mrb[1].mxu1 }
 0x35a   : > { %v1182_v3 = vadd.f32 %v2260_v63, %v1181_v2 }
 0x35b   : > { %v1191_v6 = vmul.f32 0.25, %v1187_v1 }
 0x35c   : > { %v3200_v4 = vpack.i.bf16 %v1187_v1, %v1182_v3  ;;  %v1190_v5 = vmul.f32 0.25, %v1182_v3  ;;  %v1608_v3 = vld [vmem:[%s3532_s23] sm:$0xff] }
 0x35e   : > { %2625 = vrot.lane.b32.xlu1 %v3200_v4, %s2821_s24  ;;  %2620 = vrot.lane.b32.xlu0 %v3200_v4, %s2822_s22  ;;  %s3539_s22 = sld [smem:[#allocation16_spill]] }
 0x35f   : > { %2380 = vmatprep.mubr.msk.f32.mxu1 %vm1198_vm6, %v1190_v5 }
 0x362   : > { %1395 = vrot.lane.b32.xlu1 %v1190_v5, %s2823_s28 }
 0x366   : > { %1397 = vrot.lane.b32.xlu1 %v1191_v6, %s2823_s28 }
 0x3d0   : > { %v2626_v7 = vpop.permute.xlu1 %2625  ;;  %v2621_v8 = vpop.permute.xlu0 %2620 }
 0x3d1   : > { %v2628_v9 = vunpack.i.h.bf16 %v2626_v7  ;;  %v2627_v10 = vunpack.i.l.bf16 %v2626_v7  ;;  %v2623_v11 = vunpack.i.h.bf16 %v2621_v8  ;;  %v2622_v12 = vunpack.i.l.bf16 %v2621_v8  ;;  %v1611_v7 = vld [vmem:[%s3532_s23 + $0x18] sm:$0xff] }
 0x3d3   : > { %v2457_v13 = vpack.c.bf16 %v2623_v11, %v2622_v12  ;;  %v2467_v14 = vpack.c.bf16 %v2628_v9, %v2627_v10 }
 0x3d4   : > { %v1396_v15 = vpop.permute.xlu1 %1395 }
 0x3d5   : > { %2459 = vmatprep.subr.msk.bf16.mxu1 %vm2458_vm7, %v2457_v13 }
 0x3d6   : > { %2462 = vmatpush3.bf16.xpose.msk.msra.mxu1 %vm2458_vm7, %v2457_v13 }
 0x3d7   : > { %2469 = vmatprep.subr.msk.bf16.mxu1 %vm2458_vm7, %v2467_v14 }
 0x3d8   : > { %v1398_v16 = vpop.permute.xlu1 %1397 }
 0x3dd   : > { %2381 = vmatmul.mubr.msk.f32.vlgmr.msra.gmra.mrb[2].mxu1 %vm1198_vm6, %v1191_v6  ;;  %v1610_v6 = vld [vmem:[%s3532_s23 + $0x10] sm:$0xff] }
 0x3de   : > { %2472 = vmatpush3.bf16.xpose.msk.msra.mxu1 %vm2458_vm7, %v2467_v14  ;;  %2394 = vmatprep.mubr.msk.f32.mxu1 %vm1198_vm6, %v1396_v15  ;;  %v2481_v8 = vpack.c.bf16 %v1611_v7, %v1610_v6  ;;  %v2282_v6 = vld [vmem:[%s850_s11] ss:$0 sm:$0xff]  ;;  %s3540_s11 = sld [smem:[#allocation10_spill]] }
 0x3e4   : > { %s3543_s0 = sand.u32 1, %s3540_s11  }
 0x3e5   : > { %2395 = vmatmul.mubr.msk.f32.vlgmr.msra.gmra.mrb[4].mxu1 %vm1198_vm6, %v1398_v16  ;;  %s3300_s16 = scalar_lea.sflag [#allocation6], %s3543_s0 }
 0x4b0   : > { %v2382_v17 = vpop.f32.mrb[2].mxu1 }
 0x4b1   : > { %v1275_v18 = vpop.f32.mrb[3].mxu1  ;;  %v1287_v19 = vsel %vm1198_vm6, %v2382_v17, -inf }
 0x4b2   : > { %1288 = vmax.xlane.f32.xlu1 %v1287_v19  ;;  %v1284_v20 = vsel %vm1198_vm6, %v1275_v18, -inf }
 0x4b3   : > { %1285 = vmax.xlane.f32.xlu0 %v1284_v20 }
 0x4b8   : > { %v2396_v21 = vpop.f32.mrb[4].mxu1 }
 0x4b9   : > { %v1477_v22 = vpop.f32.mrb[5].mxu1  ;;  %v1489_v24 = vsel %vm1198_vm6, %v2396_v21, -inf }
 0x4ba   : > { %v1486_v23 = vsel %vm1198_vm6, %v1477_v22, -inf }
 0x4bb   : > { %1487 = vmax.xlane.f32.xlu0 %v1486_v23 }
 0x4bf   : > { %1490 = vmax.xlane.f32.xlu0 %v1489_v24 }
 0x53f   : > { %v1289_v25 = vpop.xlane.xlu1 %1288 }
 0x540   : > { %v1291_v26 = vsub.f32 %v2382_v17, %v1289_v25  ;;  %v1286_v29 = vpop.xlane.xlu0 %1285 }
 0x541   : > { %v1290_v30 = vsub.f32 %v1275_v18, %v1286_v29  ;;  %v2279_v18 = vld [vmem:[%s3534_s15] ss:$0 sm:$0xff]  ;;  %s3542_s15 = sld [smem:[#allocation45_spill]] }
 0x542   : > { %v1294_v31 = vmul.f32 1.442695, %v1291_v26 }
 0x543   : > { %v1292_v32 = vmul.f32 1.442695, %v1290_v30 }
 0x544   : > { %2643 = vpow2.f32 %v1294_v31 }
 0x545   : > { %2645 = vpow2.f32 %v1292_v32 }
 0x548   : > { %v1488_v33 = vpop.xlane.xlu0 %1487 }
 0x549   : > { %v1492_v34 = vsub.f32 %v1477_v22, %v1488_v33 }
 0x54b   : > { %v1494_v35 = vmul.f32 1.442695, %v1492_v34 }
 0x54c   : > { %v1491_v36 = vpop.xlane.xlu0 %1490 }
 0x54d   : > { %2647 = vpow2.f32 %v1494_v35  ;;  %v1493_v37 = vsub.f32 %v2396_v21, %v1491_v36  ;;  %v1748_v36 = vld [vmem:[%s3116_s25] sm:$0xff] }
 0x54e   : > { %v2644_v38 = vpop.eup %2643 }
 0x54f   : > { %v2646_v39 = vpop.eup %2645  ;;  %v1496_v40 = vmul.f32 1.442695, %v1493_v37  ;;  %v1299_v41 = vsel %vm1198_vm6, %v2644_v38, 0.0  ;;  %v1749_v37 = vld [vmem:[%s3116_s25 + $0x8] sm:$0xff] }
 0x550   : > { %1300 = vadd.xlane.f32.xlu1 %v1299_v41  ;;  %v1296_v42 = vsel %vm1198_vm6, %v2646_v39, 0.0 }
 0x551   : > { %2649 = vpow2.f32 %v1496_v40  ;;  %1297 = vadd.xlane.f32.xlu0 %v1296_v42  ;;  %v1751_v40 = vld [vmem:[%s3116_s25 + $0x18] sm:$0xff] }
 0x557   : > { %v2648_v43 = vpop.eup %2647 }
 0x558   : > { %v1498_v44 = vsel %vm1198_vm6, %v2648_v43, 0.0 }
 0x559   : > { %1499 = vadd.xlane.f32.xlu0 %v1498_v44 }
 0x55b   : > { %v2650_v45 = vpop.eup %2649 }
 0x55c   : > { %v1501_v46 = vsel %vm1198_vm6, %v2650_v45, 0.0 }
 0x55d   : > { %1502 = vadd.xlane.f32.xlu1 %v1501_v46 }
 0x56e   : > { %2635 = vrot.lane.b32.xlu1 %v3200_v4, %s2824_s21 }
 0x56f   : > { %2630 = vrot.lane.b32.xlu0 %v3200_v4, %s2825_s5  ;;  %v1609_v4 = vld [vmem:[%s3532_s23 + $0x8] sm:$0xff]  ;;  %s2293_s5 = sshll.u32 %s3539_s22, 3 }
 0x570   : > { %v2477_v5 = vpack.c.bf16 %v1609_v4, %v1608_v3  ;;  %v1864_v3 = vld [vmem:[%s3130_s13 + $0x30] sm:$0xff]  ;;  %v1865_v4 = vld [vmem:[%s3130_s13 + $0x38] sm:$0xff] }
 0x5dd   : > { %v1301_v47 = vpop.xlane.xlu1 %1300 }
 0x5de   : > { %2651 = vrcp.f32 %v1301_v47  ;;  %v1298_v48 = vpop.xlane.xlu0 %1297 }
 0x5df   : > { %2653 = vrcp.f32 %v1298_v48 }
 0x5e6   : > { %v1500_v49 = vpop.xlane.xlu0 %1499 }
 0x5e7   : > { %2655 = vrcp.f32 %v1500_v49  ;;  %v2280_v49 = vld [vmem:[%s3536_s1] ss:$0 sm:$0xff]  ;;  %s2667_s1 = scalar_lea.vmem %s3296_s19, 512 }
 0x5e8   : > { %v2652_v50 = vpop.eup %2651  ;;  %p2668_p8 = scmp.ne.s32.totalorder %s3296_s19, %s2667_s1 }
 0x5e9   : > { %v2654_v51 = vpop.eup %2653  ;;  %v1305_v52 = vmul.f32 %v2652_v50, %v2644_v38  ;;  %v2485_v38 = vpack.c.bf16 %v1749_v37, %v1748_v36 }
 0x5ea   : > { %v1503_v53 = vpop.xlane.xlu1 %1502  ;;  %v2631_v54 = vpop.permute.xlu0 %2630  ;;  %v1303_v55 = vmul.f32 %v2654_v51, %v2646_v39  ;;  %v1750_v39 = vld [vmem:[%s3116_s25 + $0x10] sm:$0xff]  ;;  %v2281_v51 = vld [vmem:[%s842_s18] ss:$0 sm:$0xff]  ;;  %p2669_p9 = pnand %p2668_p8, %p3036_p12  ;;  %s2827_s25 = smov [#allocation5]  }
 0x5eb   : > { %2657 = vrcp.f32 %v1503_v53  ;;  %v2633_v56 = vunpack.i.h.bf16 %v2631_v54  ;;  %v2632_v57 = vunpack.i.l.bf16 %v2631_v54  ;;  %1307 = vst.msk [vmem:[%s3134_s26 + $0x8] sm:$0xff] %vm1198_vm6, %v1305_v52  ;;  %2486 = vmatprep.subr.bf16.mxu1 %v2485_v38  ;;  %v2489_v41 = vpack.c.bf16 %v1751_v40, %v1750_v39 }
 0x5ec   : > { %1306 = vst.msk [vmem:[%s3134_s26] sm:$0xff] %vm1198_vm6, %v1303_v55  ;;  %2387 = vmatprep.mubr.msk.f32.mxu0 %vm1198_vm6, %v1303_v55  ;;  %2488 = vmatpush3.bf16.msra.mxu1 %v2485_v38  ;;  %p2670_p10 = pneg %p2669_p9 }
 0x5ed   : > { %v2463_v58 = vpack.c.bf16 %v2633_v56, %v2632_v57  ;;  %2490 = vmatprep.subr.bf16.mxu1 %v2489_v41 }
 0x5ee   : > { %v2636_v59 = vpop.permute.xlu1 %2635 }
 0x5ef   : > { %v2638_v60 = vunpack.i.h.bf16 %v2636_v59  ;;  %v2637_v61 = vunpack.i.l.bf16 %v2636_v59  ;;  %2464 = vmatprep.subr.bf16.mxu0 %v2463_v58  ;;  %v1859_v59 = vld [vmem:[%s3130_s13 + $0x8] sm:$0xff] }
 0x5f0   : > { %2466 = vmatpush3.bf16.msra.mxu0 %v2463_v58  ;;  %2492 = vmatpush3.bf16.msra.mxu1 %v2489_v41  ;;  %v1858_v58 = vld [vmem:[%s3130_s13] sm:$0xff] }
 0x5f1   : > { %v2656_v62 = vpop.eup %2655  ;;  %v2473_v63 = vpack.c.bf16 %v2638_v60, %v2637_v61  ;;  %v2493_v60 = vpack.c.bf16 %v1859_v59, %v1858_v58  ;;  %v1860_v61 = vld [vmem:[%s3130_s13 + $0x10] sm:$0xff] }
 0x5f2   : > { %v1505_v0 = vmul.f32 %v2656_v62, %v2648_v43  ;;  %v1861_v62 = vld [vmem:[%s3130_s13 + $0x18] sm:$0xff] }
 0x5f3   : > { %2388 = vmatmul.mubr.msk.f32.vlgmr.msra.gmra.mrb[0].mxu0 %vm1198_vm6, %v1305_v52  ;;  %2474 = vmatprep.subr.bf16.mxu0 %v2473_v63 }
 0x5f4   : > { %2476 = vmatpush3.bf16.msra.mxu0 %v2473_v63  ;;  %2273 = vst.msk [vmem:[%s3134_s26 + $0x10] sm:$0xff] %vm1198_vm6, %v1505_v0  ;;  %2401 = vmatprep.mubr.msk.f32.mxu0 %vm1198_vm6, %v1505_v0  ;;  %v2497_v63 = vpack.c.bf16 %v1861_v62, %v1860_v61  ;;  %v1862_v0 = vld [vmem:[%s3130_s13 + $0x20] sm:$0xff] }
 0x5f5   : > { %v2658_v1 = vpop.eup %2657  ;;  %2478 = vmatprep.subr.bf16.mxu0 %v2477_v5 }
 0x5f6   : > { %v1507_v2 = vmul.f32 %v2658_v1, %v2650_v45  ;;  %v1863_v1 = vld [vmem:[%s3130_s13 + $0x28] sm:$0xff]  ;;  %s3538_s13 = sld [smem:[#allocation15_spill]] }
 0x5f8   : > { %2274 = vst.msk [vmem:[%s3134_s26 + $0x18] sm:$0xff] %vm1198_vm6, %v1507_v2  ;;  %2402 = vmatmul.mubr.msk.f32.vlgmr.msra.gmra.mrb[2].mxu0 %vm1198_vm6, %v1507_v2  ;;  %v2501_v2 = vpack.c.bf16 %v1863_v1, %v1862_v0  ;;  %s2671_s26 = sshll.u32 %s2827_s25, 4  ;;  %s2672_s26 = int_to_ptr.vmem [resolvable:$false] %s2671_s26 }
 0x5f9   : > { %2480 = vmatpush3.bf16.msra.mxu0 %v2477_v5  ;;  %v2505_v5 = vpack.c.bf16 %v1865_v4, %v1864_v3  ;;  %s2673_s4 = scalar_lea.vmem %s2672_s26, 1024  ;;  %p2674_p11 = scmp.lt.s32.totalorder %s3296_s19, %s2672_s26 }
 0x5fa   : > { %2482 = vmatprep.subr.bf16.mxu0 %v2481_v8  ;;  %p2675_p0 = scmp.lt.s32.totalorder %s2673_s4, %s2667_s1 }
 0x5fc   : > { %s2292_s21 = sshll.u32 %s3538_s13, 2  ;;  %p2676_p1 = por %p2675_p0, %p2674_p11 }
 0x5fd   : > { %2484 = vmatpush3.bf16.msra.mxu0 %v2481_v8  ;;  %s1995_s23 = sadd.s32 %s2293_s5, %s2292_s21 }
 0x5fe   : > { %2494 = vmatprep.subr.bf16.mxu0 %v2493_v60  ;;  %p2677_p4 = pnand %p2676_p1, %p2670_p10 }
 0x6c6   : > { %v2389_v9 = vpop.f32.mrb[0].mxu0 }
 0x6c7   : > { %v1386_v10 = vpop.f32.mrb[1].mxu0 }
 0x6cb   : > { %v2403_v11 = vpop.f32.mrb[2].mxu0 }
 0x6cc   : > { %v1589_v12 = vpop.f32.mrb[3].mxu0 }
 0x6cd   : > { %1600 = vrot.lane.b32.xlu1 %v1589_v12, %s2826_s2 }
 0x6d1   : > { %1602 = vrot.lane.b32.xlu1 %v2403_v11, %s2826_s2  ;;  %s2294_s2 = sshll.u32 %s1995_s23, 7 }
 0x6d2   : > { %s3294_s27 = scalar_lea.hbm %s3542_s15, %s2294_s2 }
 0x73f   : > { %v1601_v13 = vpop.permute.xlu1 %1600 }
 0x740   : > { %v1606_v14 = vsel %vm1198_vm6, %v1386_v10, %v1601_v13 }
 0x741   : > { %2412 = vmatprep.mubr.msk.f32.mxu0 %vm1054_vm5, %v1606_v14 }
 0x743   : > { %v1603_v15 = vpop.permute.xlu1 %1602 }
 0x744   : > { %v1607_v16 = vsel %vm1198_vm6, %v2389_v9, %v1603_v15 }
 0x745   : > { %2413 = vmatmul.mubr.msk.f32.vlgmr.msra.gmra.mrb[4].mxu0 %vm1054_vm5, %v1607_v16 }
 0x746   : > { %2496 = vmatpush3.bf16.msra.mxu0 %v2493_v60 }
 0x747   : > { %2498 = vmatprep.subr.bf16.mxu0 %v2497_v63 }
 0x74a   : > { %2500 = vmatpush3.bf16.msra.mxu0 %v2497_v63 }
 0x74b   : > { %2502 = vmatprep.subr.bf16.mxu0 %v2501_v2 }
 0x74e   : > { %2504 = vmatpush3.bf16.msra.mxu0 %v2501_v2 }
 0x74f   : > { %2506 = vmatprep.subr.bf16.mxu0 %v2505_v5 }
 0x752   : > { %2508 = vmatpush3.bf16.msra.mxu0 %v2505_v5 }
 0x818   : > { %v2414_v17 = vpop.f32.mrb[4].mxu0 }
 0x819   : > { %v1694_v19 = vadd.f32 %v2414_v17, %v3169_v28  ;;  %v1684_v20 = vpop.f32.mrb[5].mxu0 }
 0x81a   : > { %v1693_v21 = vadd.f32 %v1684_v20, %v3167_v27 }
 0x81b   : > { %v3247_v22 = vadd.f32 %v2279_v18, %v1694_v19 }
 0x81c   : > { %v3249_v23 = vadd.f32 %v2279_v18, %v1693_v21 }
 0x81d   : > { %v1709_v24 = vsel %vm1054_vm5, %v3247_v22, 0.0 }
 0x81e   : > { %1710 = vadd.xlane.f32.xlu1 %v1709_v24  ;;  %v1706_v25 = vsel %vm1054_vm5, %v3249_v23, 0.0 }
 0x81f   : > { %1707 = vadd.xlane.f32.xlu0 %v1706_v25 }
 0x8ab   : > { %v1711_v26 = vpop.xlane.xlu1 %1710 }
 0x8ac   : > { %v1713_v29 = vmul.f32 0.03125, %v1711_v26  ;;  %v1708_v28 = vpop.xlane.xlu0 %1707 }
 0x8ad   : > { %v1712_v27 = vmul.f32 0.03125, %v1708_v28 }
 0x8ae   : > { %v1715_v30 = vsub.f32 %v3247_v22, %v1713_v29 }
 0x8af   : > { %v1714_v31 = vsub.f32 %v3249_v23, %v1712_v27 }
 0x8b0   : > { %v1717_v34 = vmul.f32 %v1715_v30, %v1715_v30 }
 0x8b1   : > { %v1716_v32 = vmul.f32 %v1714_v31, %v1714_v31 }
 0x8b2   : > { %v1721_v35 = vsel %vm1054_vm5, %v1717_v34, 0.0 }
 0x8b3   : > { %v1718_v33 = vsel %vm1054_vm5, %v1716_v32, 0.0 }
 0x8b4   : > { %1719 = vadd.xlane.f32.xlu0 %v1718_v33 }
 0x8b8   : > { %1722 = vadd.xlane.f32.xlu0 %v1721_v35 }
 0x941   : > { %v1720_v42 = vpop.xlane.xlu0 %1719 }
 0x942   : > { %v1724_v43 = vmul.f32 0.03125, %v1720_v42 }
 0x944   : > { %v1726_v44 = vadd.f32 1e-05, %v1724_v43 }
 0x945   : > { %v1723_v45 = vpop.xlane.xlu0 %1722 }
 0x946   : > { %2659 = vrsqrt.f32 %v1726_v44  ;;  %v1725_v46 = vmul.f32 0.03125, %v1723_v45 }
 0x948   : > { %v1727_v47 = vadd.f32 1e-05, %v1725_v46 }
 0x94a   : > { %2661 = vrsqrt.f32 %v1727_v47 }
 0x950   : > { %v2660_v48 = vpop.eup %2659 }
 0x951   : > { %v1730_v50 = vmul.f32 %v2660_v48, %v1714_v31 }
 0x953   : > { %v1738_v52 = vmul.f32 %v2280_v49, %v1730_v50 }
 0x954   : > { %v2662_v53 = vpop.eup %2661 }
 0x955   : > { %v1731_v54 = vmul.f32 %v2662_v53, %v1715_v30  ;;  %v1746_v55 = vadd.f32 %v2281_v51, %v1738_v52 }
 0x957   : > { %v1739_v56 = vmul.f32 %v2280_v49, %v1731_v54  ;;  %2423 = vmatprep.mubr.msk.f32.mxu1 %vm1054_vm5, %v1746_v55 }
 0x959   : > { %v1747_v57 = vadd.f32 %v2281_v51, %v1739_v56 }
 0x95b   : > { %2424 = vmatmul.mubr.msk.f32.vlgmr.msra.gmra.mrb[6].mxu1 %vm1054_vm5, %v1747_v57 }
 0xa2e   : > { %v2425_v7 = vpop.f32.mrb[6].mxu1 }
 0xa2f   : > { %v1837_v8 = vadd.f32 %v2425_v7, %v2282_v6  ;;  %v1831_v9 = vpop.f32.mrb[7].mxu1 }
 0xa30   : > { %v1832_v10 = vadd.f32 %v2282_v6, %v1831_v9 }
 0xa31   : > { %v1841_v11 = vmul.f32 %v1837_v8, %v1837_v8 }
 0xa32   : > { %v1840_v12 = vmul.f32 %v1832_v10, %v1832_v10 }
 0xa33   : > { %v1843_v13 = vmul.f32 %v1841_v11, %v1837_v8 }
 0xa34   : > { %v1842_v14 = vmul.f32 %v1840_v12, %v1832_v10 }
 0xa35   : > { %v1845_v15 = vmul.f32 0.044715, %v1843_v13 }
 0xa36   : > { %v1844_v16 = vmul.f32 0.044715, %v1842_v14 }
 0xa37   : > { %v1847_v17 = vadd.f32 %v1845_v15, %v1837_v8 }
 0xa38   : > { %v1846_v18 = vadd.f32 %v1844_v16, %v1832_v10 }
 0xa39   : > { %v1849_v19 = vmul.f32 0.7978846, %v1847_v17 }
 0xa3a   : > { %v1848_v20 = vmul.f32 0.7978846, %v1846_v18 }
 0xa3b   : > { %2663 = vtanh.f32 %v1849_v19 }
 0xa3c   : > { %2665 = vtanh.f32 %v1848_v20 }
 0xa45   : > { %v2664_v21 = vpop.eup %2663 }
 0xa46   : > { %v2666_v24 = vpop.eup %2665  ;;  %v1853_v25 = vadd.f32 1.0, %v2664_v21 }
 0xa47   : > { %v1852_v26 = vadd.f32 1.0, %v2666_v24 }
 0xa48   : > { %v1855_v29 = vmul.f32 0.5, %v1853_v25 }
 0xa49   : > { %v1854_v28 = vmul.f32 0.5, %v1852_v26 }
 0xa4a   : > { %v1857_v30 = vmul.f32 %v1855_v29, %v1837_v8 }
 0xa4b   : > { %v1856_v27 = vmul.f32 %v1854_v28, %v1832_v10 }
 0xa4d   : > { %2442 = vmatprep.mubr.msk.f32.mxu0 %vm1873_vm8, %v1856_v27 }
 0xa4e   : > { %2443 = vmatmul.mubr.msk.f32.vlgmr.msra.gmra.mrb[6].mxu0 %vm1873_vm8, %v1857_v30 }
 0xa4f   : > { %2680 = shalt.err (!%p2677_p4)
}
 0xa50   : > { %s2681_s18 = scalar_lea.hbm %s3294_s27, 512  ;;  %s2685_s13 = scalar_lea.hbm %s3542_s15, 2048 }
 0xa51   : > { %p2682_p2 = scmp.ne.s32.totalorder %s3294_s27, %s2681_s18  ;;  %p2686_p8 = scmp.lt.u32.totalorder %s3294_s27, %s3542_s15 }
 0xa52   : > { %p2687_p9 = scmp.lt.u32.totalorder %s2685_s13, %s2681_s18  ;;  %p2689_p11 = scmp.lt.u32.totalorder %s2681_s18, %s3294_s27 }
 0xa53   : > { %p2683_p5 = pnand %p2682_p2, %p3036_p12 }
 0xa54   : > { %p2688_p10 = por %p2687_p9, %p2686_p8 }
 0xa55   : > { %p2684_p6 = pneg %p2683_p5 }
 0xa56   : > { %p2690_p0 = por %p2689_p11, %p2688_p10 }
 0xa58   : > { %p2691_p1 = pnand %p2690_p0, %p2684_p6 }
 0xa5a   : > { %2694 = shalt.err (!%p2691_p1)
}
 0xa5b   : > { %s2828_s5 = smov 128   ;;  %s2829_s23 = smov 8   ;;  %v2285_v31 = vld [vmem:[%s858_s12] ss:$0 sm:$0xff] }
 0xa5c   : > { %2510 = dma.vmem_to_hbm [thread:$0]  (%p3036_p12), %s3296_s19, 512, %s3294_s27, %s3300_s16, %s2828_s5, %s2828_s5, %s2829_s23  }
 0xa5d   : > { %s3545_s0 = sld [smem:[#allocation13_spill]]  ;;  %s2302_s25 = sshll.u32 %s3539_s22, 8 }
 0xa5e   : > { %s1980_s26 = sshll.u32 %s3132_s3, 4  ;;  %s3547_s19 = sld [smem:[#allocation44_spill]]  ;;  %s3341_s26 = int_to_ptr.vmem [resolvable:$true] %s1980_s26 }
 0xa5f   : > { %s2695_s22 = scalar_lea.vmem %s3341_s26, 256  ;;  %s2830_s16 = smov [#allocation3]  }
 0xa60   : > { %p2696_p12 = scmp.ne.s32.totalorder %s3341_s26, %s2695_s22  ;;  %s2699_s18 = sshll.u32 %s2830_s16, 4  ;;  %s2700_s18 = int_to_ptr.vmem [resolvable:$false] %s2699_s18 }
 0xa61   : > { %s2701_s30 = scalar_lea.vmem %s2700_s18, 512  ;;  %p2702_p5 = scmp.lt.s32.totalorder %s3341_s26, %s2700_s18 }
 0xa62   : > { %p2697_p4 = pnand %p2696_p12, %p3007_p3  ;;  %p2703_p6 = scmp.lt.s32.totalorder %s2701_s30, %s2695_s22 }
 0xa63   : > { %s3548_s12 = sand.u32 1, %s3545_s0  }
 0xa64   : > { %s3339_s27 = scalar_lea.hbm %s3547_s19, %s2302_s25  ;;  %s3351_s29 = scalar_lea.sflag [#allocation4], %s3548_s12 }
 0xa65   : > { %p2698_p2 = pneg %p2697_p4  ;;  %p2704_p8 = por %p2703_p6, %p2702_p5 }
 0xa67   : > { %p2705_p9 = pnand %p2704_p8, %p2698_p2 }
 0xb21   : > { %v2444_v32 = vpop.f32.mrb[6].mxu0 }
 0xb22   : > { %v1952_v33 = vadd.f32 %v2444_v32, %v2285_v31  ;;  %v1946_v34 = vpop.f32.mrb[7].mxu0 }
 0xb23   : > { %v1947_v35 = vadd.f32 %v2285_v31, %v1946_v34 }
 0xb24   : > { %v1956_v36 = vadd.f32 %v1952_v33, %v3247_v22 }
 0xb25   : > { %v1955_v37 = vadd.f32 %v1947_v35, %v3249_v23 }
 0xb26   : > { %1958 = vst.msk [vmem:[#allocation2 + $0x8] sm:$0xff] %vm1054_vm5, %v1956_v36  ;;  %1960 = vst.msk [vmem:[%s3132_s3 + $0x8] sm:$0xff] %vm1054_vm5, %v1956_v36 }
 0xb27   : > { %1957 = vst.msk [vmem:[#allocation2] sm:$0xff] %vm1054_vm5, %v1955_v37  ;;  %1959 = vst.msk [vmem:[%s3132_s3] sm:$0xff] %vm1054_vm5, %v1955_v37 }
 0xb28   : > { %2708 = shalt.err (!%p2705_p9)
}
 0xb29   : > { %s2709_s3 = scalar_lea.hbm %s3339_s27, 256  ;;  %s2713_s11 = scalar_lea.hbm %s3547_s19, 512 }
 0xb2a   : > { %p2710_p10 = scmp.ne.s32.totalorder %s3339_s27, %s2709_s3  ;;  %p2714_p1 = scmp.lt.u32.totalorder %s3339_s27, %s3547_s19 }
 0xb2b   : > { %p2715_p12 = scmp.lt.u32.totalorder %s2713_s11, %s2709_s3  ;;  %p2717_p2 = scmp.lt.u32.totalorder %s2709_s3, %s3339_s27 }
 0xb2c   : > { %p2711_p11 = pnand %p2710_p10, %p3007_p3 }
 0xb2d   : > { %p2716_p4 = por %p2715_p12, %p2714_p1 }
 0xb2e   : > { %p2712_p0 = pneg %p2711_p11 }
 0xb2f   : > { %p2718_p5 = por %p2717_p2, %p2716_p4 }
 0xb31   : > { %p2719_p6 = pnand %p2718_p5, %p2712_p0 }
 0xb33   : > { %2722 = shalt.err (!%p2719_p6)
}
 0xb34   : > { %2509 = dma.vmem_to_hbm [thread:$0]  (%p3007_p3), %s3341_s26, 256, %s3339_s27, %s3351_s29, %s2828_s5, %s2828_s5, %s2829_s23  }
 0xb35 PF: > { %s3549_s20 = sld [smem:[#allocation19_spill]]  ;;  %s3550_s17 = sld [smem:[#allocation12_spill]] }
 0xb3b   : > { %p2520_p8 = scmp.ge.s32.totalorder %s3549_s20, 2  ;;  %s2013_s25 = sand.u32 1, %s3550_s17  }
 0xb3c   : > { %s2014_s28 = scalar_lea.sflag [#allocation4], %s2013_s25 }
 0xb3d   : > { %p2514_p9 = pnand %p2520_p8, %p3024_p7 }
 0xb3f   : > { %2768 = dma.done.wait (!%p2514_p9), %s2014_s28, 256  }
 0xb40   : > { %2770 = vsyncadd (!%p2514_p9), %s2014_s28, 4294967040  ;;  %s3552_s4 = sld [smem:[#allocation9_spill]]  ;;  %p2517_p10 = pnand %p2520_p8, %p3048_p13 }
 0xb46   : > { %s2022_s12 = sand.u32 1, %s3552_s4  }
 0xb47   : > { %s2023_s22 = scalar_lea.sflag [#allocation6], %s2022_s12 }
 0xb48   : > { %2772 = dma.done.wait (!%p2517_p10), %s2023_s22, 512  }
 0xb49   : > { %2774 = vsyncadd (!%p2517_p10), %s2023_s22, 4294966784  ;;  %s37_s4 = sadd.s32 1, %s3549_s20   ;;  %s3554_s1 = sld [smem:[#allocation10_spill]] }
 0xb4a   : > { %p34_p3 = scmp.ge.s32.totalorder %s37_s4, 6   ;;  %s3555_s22 = sld [smem:[#allocation11_spill]] }
 0xb4b   : > { %s3556_s23 = sld [smem:[#allocation26_spill]]  ;;  %s3557_s24 = sld [smem:[#allocation13_spill]] }
 0xb4c   : > { %s3558_s2 = sld [smem:[#allocation14_spill]]  ;;  %s3559_s25 = sld [smem:[#allocation25_spill]] }
 0xb4d   : > { %s3560_s3 = sld [smem:[#allocation17_spill]]  ;;  %s3561_s26 = sld [smem:[#allocation18_spill]] }
 0xb4e   : > { %s3562_s27 = sld [smem:[#allocation20_spill]]  ;;  %s3563_s28 = sld [smem:[#allocation22_spill]] }
 0xb4f   :  { %36 = sbr.rel (!%p34_p3) target bundleno = 27 (0x1b), region = 192 }
 0xb56   :  { %2028 = vsyncpa [#allocation4], 1 }
 0xb57   :  { %2030 = vsyncpa [#allocation4 + $0x1], 1 }
 0xb58   :  { %2031 = vsyncpa [#allocation6], 1 }
 0xb59   :  { %2033 = vsyncpa [#allocation6 + $0x1], 1 }

</bundles_post_ra>
